<compile_context>
chip_gen: v7x
topology: tpu7x:2x2x1
jax: 0.10.0
libtpu: 0.0.40
codegen_flags: <defaults>
</compile_context>

<pallas_src>
import jax
import jax.numpy as jnp
from jax.experimental import pallas as pl
from jax.experimental.pallas import tpu as pltpu

D_IN_RAW, D_H_RAW, D_Z_RAW = 784, 400, 20
D_IN, D_H, D_Z = 896, 512, 128          # lane-padded to multiples of 128
D_HEAD = 2 * D_Z                        # fused [mu || logvar] head width


def _round_up(n, m):
    return (n + m - 1) // m * m


def _pad2(a, rows, cols):
    return jnp.pad(a, ((0, rows - a.shape[0]), (0, cols - a.shape[1])))


def vae_kernel(x_ref, eps_ref,
               w1_ref, b1_ref,
               wh_ref, bh_ref,
               w3_ref, b3_ref,
               w4_ref, b4_ref,
               recon_ref, mulv_ref):
    # encode: h1 = relu(x @ W1 + b1)   (bf16 MXU, f32 accumulate)
    h1 = jnp.dot(x_ref[...], w1_ref[...],
                 preferred_element_type=jnp.float32) + b1_ref[...]
    h1 = jnp.maximum(h1, 0.0)

    # fused heads: [mu || logvar] in a single MXU pass
    mulv = jnp.dot(h1.astype(jnp.bfloat16), wh_ref[...],
                   preferred_element_type=jnp.float32) + bh_ref[...]
    mu = mulv[:, :D_Z]
    logvar = mulv[:, D_Z:]

    # reparameterize (training path, eps supplied): z = mu + eps * exp(0.5*logvar)
    eps = eps_ref[...].astype(jnp.float32)
    z = mu + eps * jnp.exp(0.5 * logvar)

    # decode: h3 = relu(z @ W3 + b3); recon = sigmoid(h3 @ W4 + b4)
    h3 = jnp.dot(z.astype(jnp.bfloat16), w3_ref[...],
                 preferred_element_type=jnp.float32) + b3_ref[...]
    h3 = jnp.maximum(h3, 0.0)
    logits = jnp.dot(h3.astype(jnp.bfloat16), w4_ref[...],
                     preferred_element_type=jnp.float32) + b4_ref[...]

    # sigmoid(x) = 0.5*tanh(0.5*x) + 0.5  -> single EUP op per element
    recon = 0.5 * jnp.tanh(0.5 * logits) + 0.5
    recon_ref[...] = recon.astype(jnp.bfloat16)   # lane-dense 896-wide bf16 store
    mulv_ref[...] = mulv                          # lane-dense 256-wide store


def _pick_tile(B):
    """Batch tile: big enough to hide per-step overhead, and when the batch
    allows it, small enough that the grid has >= 2 steps (v7x dual-TC)."""
    bp0 = _round_up(max(B, 1), 8)
    tb = min(512, bp0)
    if bp0 == tb and bp0 >= 16:          # would be a grid of 1 -> split in two
        tb = _round_up((bp0 + 1) // 2, 8)
    bp = _round_up(bp0, tb)
    return tb, bp


def vae_forward(x, eps, pp, unpad=True):
    """x: (B, 1, 28, 28) or (B, 784); eps: (B, 20). Returns (recon, mu, logvar).

    With unpad=False the padded kernel outputs are returned directly
    (recon_p: (Bp, 896) bf16, mulv_p: (Bp, 256) f32), avoiding the extra
    HBM pass of the compaction slices."""
    B = x.shape[0]
    x2 = jnp.asarray(x, jnp.float32).reshape(B, D_IN_RAW)

    TB, Bp = _pick_tile(B)

    xp = _pad2(x2, Bp, D_IN).astype(jnp.bfloat16)
    epsp = _pad2(jnp.asarray(eps, jnp.float32), Bp, D_Z).astype(jnp.bfloat16)

    weights = (pp["w1"], pp["b1"], pp["wh"], pp["bh"],
               pp["w3"], pp["b3"], pp["w4"], pp["b4"])

    def batch_spec(cols):
        return pl.BlockSpec((TB, cols), lambda i: (i, 0))

    def resident(a):
        # same block every grid step -> stays in VMEM; single-buffered since a
        # second pipeline buffer for a never-changing block is pure VMEM waste.
        return pl.BlockSpec(a.shape, lambda i: (0, 0),
                            pipeline_mode=pl.Buffered(1))

    grid = (Bp // TB,)

    flops = 2 * Bp * (D_IN * D_H + D_H * D_HEAD + D_Z * D_H + D_H * D_IN)
    weight_bytes = sum(int(w.size) * w.dtype.itemsize for w in weights)
    bytes_accessed = (int(xp.size) * 2 + int(epsp.size) * 2
                      + Bp * D_IN * 2 + Bp * D_HEAD * 4 + weight_bytes)

    recon_p, mulv_p = pl.pallas_call(
        vae_kernel,
        out_shape=(
            jax.ShapeDtypeStruct((Bp, D_IN), jnp.bfloat16),   # recon (padded, bf16)
            jax.ShapeDtypeStruct((Bp, D_HEAD), jnp.float32),  # [mu || logvar] (padded)
        ),
        grid=grid,
        in_specs=[batch_spec(D_IN), batch_spec(D_Z)] + [resident(w) for w in weights],
        out_specs=(batch_spec(D_IN), batch_spec(D_HEAD)),
        compiler_params=pltpu.CompilerParams(
            dimension_semantics=("parallel",),
            vmem_limit_bytes=32 << 20),
        cost_estimate=pl.CostEstimate(
            flops=flops,
            transcendentals=Bp * (D_Z + D_IN),
            bytes_accessed=bytes_accessed),
    )(xp, epsp, *weights)

    if not unpad:
        return recon_p, mulv_p[:, :D_Z], mulv_p[:, D_Z:]

    recon = recon_p[:B, :D_IN_RAW]
    mu = mulv_p[:B, :D_Z_RAW]
    logvar = mulv_p[:B, D_Z:D_Z + D_Z_RAW]
    return recon, mu, logvar


def init_params(key):
    """torch.nn.Linear-style init; weights stored pre-transposed as (in, out)."""
    def linear(k, fan_in, fan_out):
        kw, kb = jax.random.split(k)
        bound = 1.0 / jnp.sqrt(fan_in)
        w = jax.random.uniform(kw, (fan_in, fan_out), jnp.float32, -bound, bound)
        b = jax.random.uniform(kb, (1, fan_out), jnp.float32, -bound, bound)
        return w, b

    k1, k21, k22, k3, k4 = jax.random.split(key, 5)
    w1, b1 = linear(k1, 784, 400)
    w21, b21 = linear(k21, 400, 20)
    w22, b22 = linear(k22, 400, 20)
    w3, b3 = linear(k3, 20, 400)
    w4, b4 = linear(k4, 400, 784)
    return dict(w1=w1, b1=b1, w21=w21, b21=b21, w22=w22, b22=b22,
                w3=w3, b3=b3, w4=w4, b4=b4)


def pack_params(p):
    """Pad lane dims to multiples of 128, fuse mu/logvar heads, cast weights to bf16."""
    w1 = _pad2(p["w1"], D_IN, D_H).astype(jnp.bfloat16)
    b1 = _pad2(p["b1"], 1, D_H)
    wh = jnp.concatenate(
        [_pad2(p["w21"], D_H, D_Z), _pad2(p["w22"], D_H, D_Z)], axis=1
    ).astype(jnp.bfloat16)
    bh = jnp.concatenate([_pad2(p["b21"], 1, D_Z), _pad2(p["b22"], 1, D_Z)], axis=1)
    w3 = _pad2(p["w3"], D_Z, D_H).astype(jnp.bfloat16)
    b3 = _pad2(p["b3"], 1, D_H)
    w4 = _pad2(p["w4"], D_H, D_IN).astype(jnp.bfloat16)
    b4 = _pad2(p["b4"], 1, D_IN)
    return dict(w1=w1, b1=b1, wh=wh, bh=bh, w3=w3, b3=b3, w4=w4, b4=b4)


def reference_forward(x, eps, p):
    """Pure-JAX reference with the same bf16 weight/activation casts as the kernel."""
    bf = jnp.bfloat16
    xb = jnp.asarray(x, jnp.float32).reshape(x.shape[0], D_IN_RAW).astype(bf)
    h1 = jnp.maximum(jnp.dot(xb, p["w1"].astype(bf),
                             preferred_element_type=jnp.float32) + p["b1"], 0.0)
    h1b = h1.astype(bf)
    mu = jnp.dot(h1b, p["w21"].astype(bf),
                 preferred_element_type=jnp.float32) + p["b21"]
    logvar = jnp.dot(h1b, p["w22"].astype(bf),
                     preferred_element_type=jnp.float32) + p["b22"]
    eps_bf = jnp.asarray(eps, jnp.float32).astype(bf).astype(jnp.float32)
    z = mu + eps_bf * jnp.exp(0.5 * logvar)
    h3 = jnp.maximum(jnp.dot(z.astype(bf), p["w3"].astype(bf),
                             preferred_element_type=jnp.float32) + p["b3"], 0.0)
    logits = jnp.dot(h3.astype(bf), p["w4"].astype(bf),
                     preferred_element_type=jnp.float32) + p["b4"]
    return jax.nn.sigmoid(logits), mu, logvar


if __name__ == "__main__":
    key = jax.random.PRNGKey(0)
    kx, keps, kp = jax.random.split(key, 3)

    B = 2
    # emulate an MNIST-like NCHW input (B,1,28,28) that forward() views as (-1, 784)
    x_img = jax.random.normal(kx, (B, 1, 28, 28), jnp.float32)
    eps = jax.random.normal(keps, (B, D_Z_RAW), jnp.float32)

    raw_params = init_params(kp)
    packed_params = pack_params(raw_params)

    recon, mu, logvar = vae_forward(x_img, eps, packed_params)
    jax.block_until_ready((recon, mu, logvar))

    # correctness check against a pure-JAX reference using identical bf16 casts
    r_ref, mu_ref, lv_ref = reference_forward(x_img, eps, raw_params)
    assert jnp.allclose(mu, mu_ref, atol=2e-2, rtol=2e-2)
    assert jnp.allclose(logvar, lv_ref, atol=2e-2, rtol=2e-2)
    assert jnp.allclose(recon.astype(jnp.float32), r_ref, atol=2e-2, rtol=2e-2)

    print("KERNEL_OK")
</pallas_src>

<mosaic_0001>
module attributes {stable_mosaic.version = 11 : i64} {
  func.func @vae_kernel(%arg0: i32, %arg1: memref<8x896xbf16, #tpu.memory_space<vmem>>, %arg2: memref<8x128xbf16, #tpu.memory_space<vmem>>, %arg3: memref<896x512xbf16, #tpu.memory_space<vmem>>, %arg4: memref<1x512xf32, #tpu.memory_space<vmem>>, %arg5: memref<512x256xbf16, #tpu.memory_space<vmem>>, %arg6: memref<1x256xf32, #tpu.memory_space<vmem>>, %arg7: memref<128x512xbf16, #tpu.memory_space<vmem>>, %arg8: memref<1x512xf32, #tpu.memory_space<vmem>>, %arg9: memref<512x896xbf16, #tpu.memory_space<vmem>>, %arg10: memref<1x896xf32, #tpu.memory_space<vmem>>, %arg11: memref<8x896xbf16, #tpu.memory_space<vmem>>, %arg12: memref<8x256xf32, #tpu.memory_space<vmem>>) attributes {dimension_semantics = [#tpu.dimension_semantics<parallel>], iteration_bounds = array<i64: 1>, scalar_prefetch = 0 : i64, scratch_operands = 0 : i64, tpu.core_type = #tpu.core_type<tc>, window_params = [{transform_indices = @transform_0, window_bounds = array<i64: 8, 896>}, {transform_indices = @transform_1, window_bounds = array<i64: 8, 128>}, {pipeline_mode = #tpu.pipeline_mode<synchronous>, transform_indices = @transform_2, window_bounds = array<i64: 896, 512>}, {pipeline_mode = #tpu.pipeline_mode<synchronous>, transform_indices = @transform_3, window_bounds = array<i64: 1, 512>}, {pipeline_mode = #tpu.pipeline_mode<synchronous>, transform_indices = @transform_4, window_bounds = array<i64: 512, 256>}, {pipeline_mode = #tpu.pipeline_mode<synchronous>, transform_indices = @transform_5, window_bounds = array<i64: 1, 256>}, {pipeline_mode = #tpu.pipeline_mode<synchronous>, transform_indices = @transform_6, window_bounds = array<i64: 128, 512>}, {pipeline_mode = #tpu.pipeline_mode<synchronous>, transform_indices = @transform_7, window_bounds = array<i64: 1, 512>}, {pipeline_mode = #tpu.pipeline_mode<synchronous>, transform_indices = @transform_8, window_bounds = array<i64: 512, 896>}, {pipeline_mode = #tpu.pipeline_mode<synchronous>, transform_indices = @transform_9, window_bounds = array<i64: 1, 896>}, {transform_indices = @transform_10, window_bounds = array<i64: 8, 896>}, {transform_indices = @transform_11, window_bounds = array<i64: 8, 256>}]} {
    %c0 = arith.constant 0 : index
    %c0_0 = arith.constant 0 : index
    %0 = vector.load %arg1[%c0, %c0_0] : memref<8x896xbf16, #tpu.memory_space<vmem>>, vector<8x896xbf16>
    %c0_1 = arith.constant 0 : index
    %c0_2 = arith.constant 0 : index
    %1 = vector.load %arg3[%c0_1, %c0_2] : memref<896x512xbf16, #tpu.memory_space<vmem>>, vector<896x512xbf16>
    %cst = arith.constant dense<0.000000e+00> : vector<8x512xf32>
    %2 = tpu.matmul %0, %1, %cst {dimension_numbers = #tpu.dot_dimension_numbers<[1], [0], [0], [1], [0, 0, 1, 1], [], []>} : vector<8x896xbf16>, vector<896x512xbf16>, vector<8x512xf32> -> vector<8x512xf32>
    %c0_3 = arith.constant 0 : index
    %c0_4 = arith.constant 0 : index
    %3 = vector.load %arg4[%c0_3, %c0_4] : memref<1x512xf32, #tpu.memory_space<vmem>>, vector<1x512xf32>
    %4 = vector.broadcast %3 : vector<1x512xf32> to vector<8x512xf32>
    %5 = arith.addf %2, %4 : vector<8x512xf32>
    %cst_5 = arith.constant 0.000000e+00 : f32
    %6 = vector.broadcast %cst_5 : f32 to vector<8x512xf32>
    %7 = arith.maximumf %5, %6 : vector<8x512xf32>
    %8 = arith.truncf %7 : vector<8x512xf32> to vector<8x512xbf16>
    %c0_6 = arith.constant 0 : index
    %c0_7 = arith.constant 0 : index
    %9 = vector.load %arg5[%c0_6, %c0_7] : memref<512x256xbf16, #tpu.memory_space<vmem>>, vector<512x256xbf16>
    %cst_8 = arith.constant dense<0.000000e+00> : vector<8x256xf32>
    %10 = tpu.matmul %8, %9, %cst_8 {dimension_numbers = #tpu.dot_dimension_numbers<[1], [0], [0], [1], [0, 0, 1, 1], [], []>} : vector<8x512xbf16>, vector<512x256xbf16>, vector<8x256xf32> -> vector<8x256xf32>
    %c0_9 = arith.constant 0 : index
    %c0_10 = arith.constant 0 : index
    %11 = vector.load %arg6[%c0_9, %c0_10] : memref<1x256xf32, #tpu.memory_space<vmem>>, vector<1x256xf32>
    %12 = vector.broadcast %11 : vector<1x256xf32> to vector<8x256xf32>
    %13 = arith.addf %10, %12 : vector<8x256xf32>
    %14 = vector.extract_strided_slice %13 {offsets = [0, 0], sizes = [8, 128], strides = [1, 1]} : vector<8x256xf32> to vector<8x128xf32>
    %15 = vector.extract_strided_slice %13 {offsets = [0, 128], sizes = [8, 128], strides = [1, 1]} : vector<8x256xf32> to vector<8x128xf32>
    %c0_11 = arith.constant 0 : index
    %c0_12 = arith.constant 0 : index
    %16 = vector.load %arg2[%c0_11, %c0_12] : memref<8x128xbf16, #tpu.memory_space<vmem>>, vector<8x128xbf16>
    %17 = arith.extf %16 : vector<8x128xbf16> to vector<8x128xf32>
    %cst_13 = arith.constant 5.000000e-01 : f32
    %18 = vector.broadcast %cst_13 : f32 to vector<8x128xf32>
    %19 = arith.mulf %18, %15 : vector<8x128xf32>
    %20 = math.exp %19 : vector<8x128xf32>
    %21 = arith.mulf %17, %20 : vector<8x128xf32>
    %22 = arith.addf %14, %21 : vector<8x128xf32>
    %23 = arith.truncf %22 : vector<8x128xf32> to vector<8x128xbf16>
    %c0_14 = arith.constant 0 : index
    %c0_15 = arith.constant 0 : index
    %24 = vector.load %arg7[%c0_14, %c0_15] : memref<128x512xbf16, #tpu.memory_space<vmem>>, vector<128x512xbf16>
    %cst_16 = arith.constant dense<0.000000e+00> : vector<8x512xf32>
    %25 = tpu.matmul %23, %24, %cst_16 {dimension_numbers = #tpu.dot_dimension_numbers<[1], [0], [0], [1], [0, 0, 1, 1], [], []>} : vector<8x128xbf16>, vector<128x512xbf16>, vector<8x512xf32> -> vector<8x512xf32>
    %c0_17 = arith.constant 0 : index
    %c0_18 = arith.constant 0 : index
    %26 = vector.load %arg8[%c0_17, %c0_18] : memref<1x512xf32, #tpu.memory_space<vmem>>, vector<1x512xf32>
    %27 = vector.broadcast %26 : vector<1x512xf32> to vector<8x512xf32>
    %28 = arith.addf %25, %27 : vector<8x512xf32>
    %cst_19 = arith.constant 0.000000e+00 : f32
    %29 = vector.broadcast %cst_19 : f32 to vector<8x512xf32>
    %30 = arith.maximumf %28, %29 : vector<8x512xf32>
    %31 = arith.truncf %30 : vector<8x512xf32> to vector<8x512xbf16>
    %c0_20 = arith.constant 0 : index
    %c0_21 = arith.constant 0 : index
    %32 = vector.load %arg9[%c0_20, %c0_21] : memref<512x896xbf16, #tpu.memory_space<vmem>>, vector<512x896xbf16>
    %cst_22 = arith.constant dense<0.000000e+00> : vector<8x896xf32>
    %33 = tpu.matmul %31, %32, %cst_22 {dimension_numbers = #tpu.dot_dimension_numbers<[1], [0], [0], [1], [0, 0, 1, 1], [], []>} : vector<8x512xbf16>, vector<512x896xbf16>, vector<8x896xf32> -> vector<8x896xf32>
    %c0_23 = arith.constant 0 : index
    %c0_24 = arith.constant 0 : index
    %34 = vector.load %arg10[%c0_23, %c0_24] : memref<1x896xf32, #tpu.memory_space<vmem>>, vector<1x896xf32>
    %35 = vector.broadcast %34 : vector<1x896xf32> to vector<8x896xf32>
    %36 = arith.addf %33, %35 : vector<8x896xf32>
    %cst_25 = arith.constant 5.000000e-01 : f32
    %37 = vector.broadcast %cst_25 : f32 to vector<8x896xf32>
    %38 = arith.mulf %37, %36 : vector<8x896xf32>
    %39 = math.tanh %38 : vector<8x896xf32>
    %cst_26 = arith.constant 5.000000e-01 : f32
    %40 = vector.broadcast %cst_26 : f32 to vector<8x896xf32>
    %41 = arith.mulf %40, %39 : vector<8x896xf32>
    %cst_27 = arith.constant 5.000000e-01 : f32
    %42 = vector.broadcast %cst_27 : f32 to vector<8x896xf32>
    %43 = arith.addf %41, %42 : vector<8x896xf32>
    %44 = arith.truncf %43 : vector<8x896xf32> to vector<8x896xbf16>
    %c0_28 = arith.constant 0 : index
    %c0_29 = arith.constant 0 : index
    %45 = vector.load %arg11[%c0_28, %c0_29] : memref<8x896xbf16, #tpu.memory_space<vmem>>, vector<8x896xbf16>
    tpu.vector_store %arg11[%c0_28, %c0_29], %44 {strides = array<i32>} : memref<8x896xbf16, #tpu.memory_space<vmem>>, vector<8x896xbf16>,
    %c0_30 = arith.constant 0 : index
    %c0_31 = arith.constant 0 : index
    %46 = vector.load %arg12[%c0_30, %c0_31] : memref<8x256xf32, #tpu.memory_space<vmem>>, vector<8x256xf32>
    tpu.vector_store %arg12[%c0_30, %c0_31], %13 {strides = array<i32>} : memref<8x256xf32, #tpu.memory_space<vmem>>, vector<8x256xf32>,
    return
  }
  func.func @transform_0(%arg0: i32) -> (i32, i32) {
    %c0_i32 = arith.constant 0 : i32
    %c0_i32_0 = arith.constant 0 : i32
    return %arg0, %c0_i32 : i32, i32
  }
  func.func @transform_1(%arg0: i32) -> (i32, i32) {
    %c0_i32 = arith.constant 0 : i32
    %c0_i32_0 = arith.constant 0 : i32
    return %arg0, %c0_i32 : i32, i32
  }
  func.func @transform_2(%arg0: i32) -> (i32, i32) {
    %c0_i32 = arith.constant 0 : i32
    %c0_i32_0 = arith.constant 0 : i32
    %c0_i32_1 = arith.constant 0 : i32
    return %c0_i32, %c0_i32_0 : i32, i32
  }
  func.func @transform_3(%arg0: i32) -> (i32, i32) {
    %c0_i32 = arith.constant 0 : i32
    %c0_i32_0 = arith.constant 0 : i32
    %c0_i32_1 = arith.constant 0 : i32
    return %c0_i32, %c0_i32_0 : i32, i32
  }
  func.func @transform_4(%arg0: i32) -> (i32, i32) {
    %c0_i32 = arith.constant 0 : i32
    %c0_i32_0 = arith.constant 0 : i32
    %c0_i32_1 = arith.constant 0 : i32
    return %c0_i32, %c0_i32_0 : i32, i32
  }
  func.func @transform_5(%arg0: i32) -> (i32, i32) {
    %c0_i32 = arith.constant 0 : i32
    %c0_i32_0 = arith.constant 0 : i32
    %c0_i32_1 = arith.constant 0 : i32
    return %c0_i32, %c0_i32_0 : i32, i32
  }
  func.func @transform_6(%arg0: i32) -> (i32, i32) {
    %c0_i32 = arith.constant 0 : i32
    %c0_i32_0 = arith.constant 0 : i32
    %c0_i32_1 = arith.constant 0 : i32
    return %c0_i32, %c0_i32_0 : i32, i32
  }
  func.func @transform_7(%arg0: i32) -> (i32, i32) {
    %c0_i32 = arith.constant 0 : i32
    %c0_i32_0 = arith.constant 0 : i32
    %c0_i32_1 = arith.constant 0 : i32
    return %c0_i32, %c0_i32_0 : i32, i32
  }
  func.func @transform_8(%arg0: i32) -> (i32, i32) {
    %c0_i32 = arith.constant 0 : i32
    %c0_i32_0 = arith.constant 0 : i32
    %c0_i32_1 = arith.constant 0 : i32
    return %c0_i32, %c0_i32_0 : i32, i32
  }
  func.func @transform_9(%arg0: i32) -> (i32, i32) {
    %c0_i32 = arith.constant 0 : i32
    %c0_i32_0 = arith.constant 0 : i32
    %c0_i32_1 = arith.constant 0 : i32
    return %c0_i32, %c0_i32_0 : i32, i32
  }
  func.func @transform_10(%arg0: i32) -> (i32, i32) {
    %c0_i32 = arith.constant 0 : i32
    %c0_i32_0 = arith.constant 0 : i32
    return %arg0, %c0_i32 : i32, i32
  }
  func.func @transform_11(%arg0: i32) -> (i32, i32) {
    %c0_i32 = arith.constant 0 : i32
    %c0_i32_0 = arith.constant 0 : i32
    return %arg0, %c0_i32 : i32, i32
  }
}

</mosaic_0001>

<bundles_post_ra>
// kernel: tpu_custom_call.1
= control target key start
LH: loop header
LB: loop body
LE: loop exit
PB: predicated region body
PF: predicated region fallthrough
CT: control target
= control target key end

     0   :  { %17 = vsyncpa [#allocation3], 0  ;;  %s6488_s0 = inlined_call_operand.hbm [shape: bf16[8,896], index: 0, kind: input, shape index: {}]   ;;  %s6489_s1 = inlined_call_operand.hbm [shape: bf16[8,128], index: 1, kind: input, shape index: {}]   ;;  %s6490_s2 = inlined_call_operand.hbm [shape: bf16[896,512], index: 2, kind: input, shape index: {}]   ;;  %s6491_s3 = inlined_call_operand.vmem [shape: f32[1,512], index: 3, kind: input, shape index: {}]   ;;  %s6492_s4 = inlined_call_operand.hbm [shape: bf16[512,256], index: 4, kind: input, shape index: {}]   ;;  %s6493_s5 = inlined_call_operand.vmem [shape: f32[1,256], index: 5, kind: input, shape index: {}]   ;;  %s6494_s6 = inlined_call_operand.hbm [shape: bf16[128,512], index: 6, kind: input, shape index: {}]   ;;  %s6495_s7 = inlined_call_operand.vmem [shape: f32[1,512], index: 7, kind: input, shape index: {}]   ;;  %s6496_s8 = inlined_call_operand.hbm [shape: bf16[512,896], index: 8, kind: input, shape index: {}]   ;;  %s6497_s9 = inlined_call_operand.vmem [shape: f32[1,896], index: 9, kind: input, shape index: {}]   ;;  %s6498_s10 = inlined_call_operand.hbm [shape: bf16[8,896], index: 10, kind: output, shape index: {0}]   ;;  %s6499_s11 = inlined_call_operand.hbm [shape: f32[8,256], index: 11, kind: output, shape index: {1}]  }
   0x1   :  { %18 = vsyncpa [#allocation6], 0 }
   0x2   :  { %19 = vsyncpa [#allocation9], 0 }
   0x3   :  { %20 = vsyncpa [#allocation12], 0 }
   0x4   :  { %21 = vsyncpa [#allocation4], 0 }
   0x5   :  { %22 = vsyncpa [#allocation15], 0  ;;  %s6186_s17 = smov [#allocation5]   ;;  %s6187_s19 = smov [#allocation8]  }
   0x6   :  { %s39_s18 = sshll.u32 %s6186_s17, 4  ;;  %s62_s20 = sshll.u32 %s6187_s19, 4  ;;  %s40_s18 = int_to_ptr.vmem [resolvable:$true] %s39_s18  ;;  %s6261_s20 = int_to_ptr.vmem [resolvable:$true] %s62_s20 }
   0x7   :  { %s5998_s23 = scalar_lea.hbm %s6489_s1, 64 }
   0x8   :  { %p5999_p0 = scmp.ne.s32.totalorder %s6489_s1, %s5998_s23  ;;  %p6002_p1 = scmp.lt.u32.totalorder %s5998_s23, %s6489_s1 }
   0xa   :  { %p6004_p2 = pnand %p6002_p1, %p5999_p0 }
   0xc   :  { %6007 = shalt.err (!%p6004_p2)
}
   0xd   :  { %s6008_s28 = scalar_lea.vmem %s40_s18, 64  ;;  %p6013_p4 = scmp.lt.s32.totalorder %s40_s18, %s40_s18 }
   0xe   :  { %p6009_p3 = scmp.ne.s32.totalorder %s40_s18, %s6008_s28  ;;  %p6014_p5 = scmp.lt.s32.totalorder %s6008_s28, %s6008_s28 }
  0x10   :  { %p6015_p6 = por %p6014_p5, %p6013_p4 }
  0x12   :  { %p6016_p7 = pnand %p6015_p6, %p6009_p3 }
  0x14   :  { %6019 = shalt.err (!%p6016_p7)
}
  0x15   :  { %42 = dma.hbm_to_vmem [thread:$0]  %s6489_s1, 64, %s40_s18, [#allocation6]  }
  0x16   :  { %s6020_s14 = scalar_lea.hbm %s6492_s4, 8192 }
  0x17   :  { %p6021_p8 = scmp.ne.s32.totalorder %s6492_s4, %s6020_s14  ;;  %p6024_p9 = scmp.lt.u32.totalorder %s6020_s14, %s6492_s4 }
  0x19   :  { %p6026_p10 = pnand %p6024_p9, %p6021_p8 }
  0x1b   :  { %6029 = shalt.err (!%p6026_p10)
}
  0x1c   :  { %s6030_s21 = scalar_lea.vmem %s6261_s20, 8192  ;;  %p6035_p12 = scmp.lt.s32.totalorder %s6261_s20, %s6261_s20 }
  0x1d   :  { %p6031_p11 = scmp.ne.s32.totalorder %s6261_s20, %s6030_s21  ;;  %p6036_p13 = scmp.lt.s32.totalorder %s6030_s21, %s6030_s21 }
  0x1f   :  { %p6037_p0 = por %p6036_p13, %p6035_p12 }
  0x21   :  { %p6038_p1 = pnand %p6037_p0, %p6031_p11 }
  0x23   :  { %6041 = shalt.err (!%p6038_p1)
}
  0x24   :  { %s6188_s1 = smov 128   ;;  %s6189_s18 = smov 8  }
  0x25   :  { %68 = dma.hbm_to_vmem [thread:$0]  %s6492_s4, 8192, %s6261_s20, [#allocation9], %s6188_s1, %s6188_s1, %s6189_s18  }
  0x26   :  { %s6190_s24 = smov [#allocation2]   ;;  %s6191_s26 = smov [#allocation7]  }
  0x27   :  { %s29_s25 = sshll.u32 %s6190_s24, 4  ;;  %s48_s27 = sshll.u32 %s6191_s26, 4  ;;  %s30_s25 = int_to_ptr.vmem [resolvable:$true] %s29_s25  ;;  %s6292_s27 = int_to_ptr.vmem [resolvable:$true] %s48_s27 }
  0x28   :  { %s6042_s30 = scalar_lea.hbm %s6488_s0, 448 }
  0x29   :  { %p6043_p2 = scmp.ne.s32.totalorder %s6488_s0, %s6042_s30  ;;  %p6046_p3 = scmp.lt.u32.totalorder %s6042_s30, %s6488_s0 }
  0x2b   :  { %p6048_p4 = pnand %p6046_p3, %p6043_p2 }
  0x2d   :  { %6051 = shalt.err (!%p6048_p4)
}
  0x2e   :  { %s6052_s4 = scalar_lea.vmem %s30_s25, 448  ;;  %p6057_p6 = scmp.lt.s32.totalorder %s30_s25, %s30_s25 }
  0x2f   :  { %p6053_p5 = scmp.ne.s32.totalorder %s30_s25, %s6052_s4  ;;  %p6058_p7 = scmp.lt.s32.totalorder %s6052_s4, %s6052_s4 }
  0x31   :  { %p6059_p8 = por %p6058_p7, %p6057_p6 }
  0x33   :  { %p6060_p9 = pnand %p6059_p8, %p6053_p5 }
  0x35   :  { %6063 = shalt.err (!%p6060_p9)
}
  0x36   :  { %32 = dma.hbm_to_vmem [thread:$0]  %s6488_s0, 448, %s30_s25, [#allocation3]  }
  0x37   :  { %s6064_s21 = scalar_lea.hbm %s6490_s2, 28672 }
  0x38   :  { %p6065_p10 = scmp.ne.s32.totalorder %s6490_s2, %s6064_s21  ;;  %p6068_p11 = scmp.lt.u32.totalorder %s6064_s21, %s6490_s2 }
  0x3a   :  { %p6070_p12 = pnand %p6068_p11, %p6065_p10 }
  0x3c   :  { %6073 = shalt.err (!%p6070_p12)
}
  0x3d   :  { %s6074_s24 = scalar_lea.vmem %s6292_s27, 28672  ;;  %p6079_p0 = scmp.lt.s32.totalorder %s6292_s27, %s6292_s27 }
  0x3e   :  { %p6075_p13 = scmp.ne.s32.totalorder %s6292_s27, %s6074_s24  ;;  %p6080_p1 = scmp.lt.s32.totalorder %s6074_s24, %s6074_s24 }
  0x40   :  { %p6081_p2 = por %p6080_p1, %p6079_p0 }
  0x42   :  { %p6082_p3 = pnand %p6081_p2, %p6075_p13 }
  0x44   :  { %6085 = shalt.err (!%p6082_p3)
}
  0x45   :  { %s6192_s0 = smov 256   ;;  %s6193_s25 = smov 16  }
  0x46   :  { %54 = dma.hbm_to_vmem [thread:$0]  %s6490_s2, 28672, %s6292_s27, [#allocation6], %s6192_s0, %s6192_s0, %s6193_s25  }
  0x47   :  { %s6194_s29 = smov [#allocation10]   ;;  %s6195_s12 = smov [#allocation11]  }
  0x48   :  { %s76_s30 = sshll.u32 %s6194_s29, 4  ;;  %s90_s13 = sshll.u32 %s6195_s12, 4  ;;  %s77_s30 = int_to_ptr.vmem [resolvable:$true] %s76_s30  ;;  %s6323_s13 = int_to_ptr.vmem [resolvable:$true] %s90_s13 }
  0x49   :  { %s6086_s4 = scalar_lea.hbm %s6494_s6, 4096 }
  0x4a   :  { %p6087_p4 = scmp.ne.s32.totalorder %s6494_s6, %s6086_s4  ;;  %p6090_p5 = scmp.lt.u32.totalorder %s6086_s4, %s6494_s6 }
  0x4c   :  { %p6092_p6 = pnand %p6090_p5, %p6087_p4 }
  0x4e   :  { %6095 = shalt.err (!%p6092_p6)
}
  0x4f   :  { %s6096_s2 = scalar_lea.vmem %s77_s30, 4096  ;;  %p6101_p8 = scmp.lt.s32.totalorder %s77_s30, %s77_s30 }
  0x50   :  { %p6097_p7 = scmp.ne.s32.totalorder %s77_s30, %s6096_s2  ;;  %p6102_p9 = scmp.lt.s32.totalorder %s6096_s2, %s6096_s2 }
  0x52   :  { %p6103_p10 = por %p6102_p9, %p6101_p8 }
  0x54   :  { %p6104_p11 = pnand %p6103_p10, %p6097_p7 }
  0x56   :  { %6107 = shalt.err (!%p6104_p11)
}
  0x57   :  { %82 = dma.hbm_to_vmem [thread:$0]  %s6494_s6, 4096, %s77_s30, [#allocation9], %s6192_s0, %s6192_s0, %s6193_s25  }
  0x58   :  { %s6108_s22 = scalar_lea.hbm %s6496_s8, 28672 }
  0x59   :  { %p6109_p12 = scmp.ne.s32.totalorder %s6496_s8, %s6108_s22  ;;  %p6112_p13 = scmp.lt.u32.totalorder %s6108_s22, %s6496_s8 }
  0x5b   :  { %p6114_p0 = pnand %p6112_p13, %p6109_p12 }
  0x5d   :  { %6117 = shalt.err (!%p6114_p0)
}
  0x5e   :  { %s6118_s29 = scalar_lea.vmem %s6323_s13, 28672  ;;  %p6123_p2 = scmp.lt.s32.totalorder %s6323_s13, %s6323_s13 }
  0x5f   :  { %p6119_p1 = scmp.ne.s32.totalorder %s6323_s13, %s6118_s29  ;;  %p6124_p3 = scmp.lt.s32.totalorder %s6118_s29, %s6118_s29 }
  0x61   :  { %p6125_p4 = por %p6124_p3, %p6123_p2 }
  0x63   :  { %p6126_p5 = pnand %p6125_p4, %p6119_p1 }
  0x65   :  { %6129 = shalt.err (!%p6126_p5)
}
  0x66   :  { %s6196_s6 = smov 448   ;;  %s6197_s0 = smov 28  }
  0x67   :  { %96 = dma.hbm_to_vmem [thread:$0]  %s6496_s8, 28672, %s6323_s13, [#allocation12], %s6196_s6, %s6196_s6, %s6197_s0  }
  0x68   :  { %6174 = dma.done.wait [#allocation3], 448  }
  0x69   :  { %6175 = vsyncadd [#allocation3], 4294966848 }
  0x6a   :  { %6176 = dma.done.wait [#allocation6], 28736  }
  0x6b   :  { %6177 = vsyncadd [#allocation6], 4294938560 }
  0x6c   :  { %6178 = dma.done.wait [#allocation9], 12288  }
  0x6d   :  { %6179 = vsyncadd [#allocation9], 4294955008 }
  0x6e   :  { %6180 = dma.done.wait [#allocation12], 28672  }
  0x6f   :  { %6181 = vsyncadd [#allocation12], 4294938624  ;;  %v5175_v0 = vld [vmem:[#allocation7 + $0x4] ss:$16 sps:$4 sm:$0xff]   ;;  %v5177_v1 = vld [vmem:[#allocation7 + $0xc] ss:$16 sps:$4 sm:$0xff]  }
  0x70   :  { %1513 = vmatprep.subr.bf16.mxu0 %v5175_v0  ;;  %v5179_v2 = vld [vmem:[#allocation7] ss:$16 sps:$4 sm:$0xff]   ;;  %v5180_v3 = vld [vmem:[#allocation7 + $0x8] ss:$16 sps:$4 sm:$0xff]   ;;  %1677 = vmatprep.subr.bf16.mxu1 %v5177_v1  ;;  %v5181_v4 = vld [vmem:[#allocation7 + $0x24] ss:$16 sps:$4 sm:$0xff]  }
  0x71   :  { %1514 = vmatpush1.bf16.msra.mxu0 %v5179_v2  ;;  %1678 = vmatpush1.bf16.msra.mxu1 %v5180_v3  ;;  %v5183_v5 = vld [vmem:[#allocation7 + $0x2c] ss:$16 sps:$4 sm:$0xff]   ;;  %v5185_v6 = vld [vmem:[#allocation7 + $0x20] ss:$16 sps:$4 sm:$0xff]   ;;  %v5186_v7 = vld [vmem:[#allocation7 + $0x28] ss:$16 sps:$4 sm:$0xff]  }
  0x72   :  { %1515 = vmatprep.subr.bf16.mxu0 %v5181_v4  ;;  %1679 = vmatprep.subr.bf16.mxu1 %v5183_v5  ;;  %v5187_v8 = vld [vmem:[#allocation7 + $0x44] ss:$16 sps:$4 sm:$0xff]   ;;  %v5189_v9 = vld [vmem:[#allocation7 + $0x4c] ss:$16 sps:$4 sm:$0xff]   ;;  %v5191_v10 = vld [vmem:[#allocation7 + $0x40] ss:$16 sps:$4 sm:$0xff]  }
  0x73   :  { %v5192_v11 = vld [vmem:[#allocation7 + $0x48] ss:$16 sps:$4 sm:$0xff]   ;;  %v5193_v12 = vld [vmem:[#allocation7 + $0x64] ss:$16 sps:$4 sm:$0xff]   ;;  %v5195_v13 = vld [vmem:[#allocation7 + $0x6c] ss:$16 sps:$4 sm:$0xff]  }
  0x74   :  { %v5197_v14 = vld [vmem:[#allocation7 + $0x60] ss:$16 sps:$4 sm:$0xff]   ;;  %v5198_v15 = vld [vmem:[#allocation7 + $0x68] ss:$16 sps:$4 sm:$0xff]   ;;  %v5199_v16 = vld [vmem:[#allocation7 + $0x84] ss:$16 sps:$4 sm:$0xff]  }
  0x75   :  { %1516 = vmatpush1.bf16.msra.mxu0 %v5185_v6  ;;  %1680 = vmatpush1.bf16.msra.mxu1 %v5186_v7  ;;  %v5201_v17 = vld [vmem:[#allocation7 + $0x8c] ss:$16 sps:$4 sm:$0xff]   ;;  %v5203_v18 = vld [vmem:[#allocation7 + $0x80] ss:$16 sps:$4 sm:$0xff]   ;;  %v5204_v19 = vld [vmem:[#allocation7 + $0x88] ss:$16 sps:$4 sm:$0xff]  }
  0x76   :  { %1517 = vmatprep.subr.bf16.mxu0 %v5187_v8  ;;  %1681 = vmatprep.subr.bf16.mxu1 %v5189_v9  ;;  %v5205_v20 = vld [vmem:[#allocation7 + $0xa4] ss:$16 sps:$4 sm:$0xff]   ;;  %v5207_v21 = vld [vmem:[#allocation7 + $0xac] ss:$16 sps:$4 sm:$0xff]   ;;  %v5209_v22 = vld [vmem:[#allocation7 + $0xa0] ss:$16 sps:$4 sm:$0xff]  }
  0x77   :  { %v5210_v23 = vld [vmem:[#allocation7 + $0xa8] ss:$16 sps:$4 sm:$0xff]   ;;  %v5211_v24 = vld [vmem:[#allocation7 + $0xc4] ss:$16 sps:$4 sm:$0xff]   ;;  %v5213_v25 = vld [vmem:[#allocation7 + $0xcc] ss:$16 sps:$4 sm:$0xff]  }
  0x78   :  { %v5215_v26 = vld [vmem:[#allocation7 + $0xc0] ss:$16 sps:$4 sm:$0xff]   ;;  %v5216_v27 = vld [vmem:[#allocation7 + $0xc8] ss:$16 sps:$4 sm:$0xff]   ;;  %v5217_v28 = vld [vmem:[#allocation7 + $0xe4] ss:$16 sps:$4 sm:$0xff]  }
  0x79   :  { %1518 = vmatpush1.bf16.msra.mxu0 %v5191_v10  ;;  %1682 = vmatpush1.bf16.msra.mxu1 %v5192_v11  ;;  %v5219_v29 = vld [vmem:[#allocation7 + $0xec] ss:$16 sps:$4 sm:$0xff]   ;;  %v5221_v30 = vld [vmem:[#allocation7 + $0xe0] ss:$16 sps:$4 sm:$0xff]   ;;  %v5222_v31 = vld [vmem:[#allocation7 + $0xe8] ss:$16 sps:$4 sm:$0xff]  }
  0x7a   :  { %1519 = vmatprep.subr.bf16.mxu0 %v5193_v12  ;;  %1683 = vmatprep.subr.bf16.mxu1 %v5195_v13  ;;  %v5223_v32 = vld [vmem:[#allocation7 + $0x104] ss:$16 sps:$4 sm:$0xff]   ;;  %v5225_v33 = vld [vmem:[#allocation7 + $0x10c] ss:$16 sps:$4 sm:$0xff]   ;;  %v5227_v34 = vld [vmem:[#allocation7 + $0x100] ss:$16 sps:$4 sm:$0xff]  }
  0x7b   :  { %v5228_v35 = vld [vmem:[#allocation7 + $0x108] ss:$16 sps:$4 sm:$0xff]   ;;  %v5229_v36 = vld [vmem:[#allocation7 + $0x124] ss:$16 sps:$4 sm:$0xff]   ;;  %v5231_v37 = vld [vmem:[#allocation7 + $0x12c] ss:$16 sps:$4 sm:$0xff]  }
  0x7c   :  { %v5233_v38 = vld [vmem:[#allocation7 + $0x120] ss:$16 sps:$4 sm:$0xff]   ;;  %v5234_v39 = vld [vmem:[#allocation7 + $0x128] ss:$16 sps:$4 sm:$0xff]   ;;  %v5235_v40 = vld [vmem:[#allocation7 + $0x144] ss:$16 sps:$4 sm:$0xff]  }
  0x7d   :  { %1520 = vmatpush1.bf16.msra.mxu0 %v5197_v14  ;;  %1684 = vmatpush1.bf16.msra.mxu1 %v5198_v15  ;;  %v5237_v41 = vld [vmem:[#allocation7 + $0x14c] ss:$16 sps:$4 sm:$0xff]   ;;  %v5239_v42 = vld [vmem:[#allocation7 + $0x140] ss:$16 sps:$4 sm:$0xff]   ;;  %v5240_v43 = vld [vmem:[#allocation7 + $0x148] ss:$16 sps:$4 sm:$0xff]  }
  0x7e   :  { %1521 = vmatprep.subr.bf16.mxu0 %v5199_v16  ;;  %1685 = vmatprep.subr.bf16.mxu1 %v5201_v17  ;;  %v5241_v44 = vld [vmem:[#allocation7 + $0x164] ss:$16 sps:$4 sm:$0xff]   ;;  %v5243_v45 = vld [vmem:[#allocation7 + $0x16c] ss:$16 sps:$4 sm:$0xff]   ;;  %v5245_v47 = vld [vmem:[#allocation7 + $0x160] ss:$16 sps:$4 sm:$0xff]  }
  0x7f   :  { %v118_v46 = vld [vmem:[#allocation2] sm:$0xff]  ;;  %v5246_v49 = vld [vmem:[#allocation7 + $0x168] ss:$16 sps:$4 sm:$0xff]   ;;  %v5249_v51 = vld [vmem:[#allocation7 + $0x18c] ss:$16 sps:$4 sm:$0xff]  }
  0x80   :  { %v4506_v48 = vcombine.high %v118_v46, %v118_v46  ;;  %v5247_v50 = vld [vmem:[#allocation7 + $0x184] ss:$16 sps:$4 sm:$0xff]   ;;  %v5251_v52 = vld [vmem:[#allocation7 + $0x180] ss:$16 sps:$4 sm:$0xff]   ;;  %v5252_v53 = vld [vmem:[#allocation7 + $0x188] ss:$16 sps:$4 sm:$0xff]   ;;  %v4505_v4 = vcombine.low %v118_v46, %v118_v46 }
  0x81   :  { %1522 = vmatpush1.bf16.msra.mxu0 %v5203_v18  ;;  %1686 = vmatpush1.bf16.msra.mxu1 %v5204_v19  ;;  %v5253_v54 = vld [vmem:[#allocation7 + $0x1a4] ss:$16 sps:$4 sm:$0xff]   ;;  %v5255_v55 = vld [vmem:[#allocation7 + $0x1ac] ss:$16 sps:$4 sm:$0xff]   ;;  %v5257_v56 = vld [vmem:[#allocation7 + $0x1a0] ss:$16 sps:$4 sm:$0xff]  }
  0x82   :  { %1523 = vmatprep.subr.bf16.mxu0 %v5205_v20  ;;  %1687 = vmatprep.subr.bf16.mxu1 %v5207_v21  ;;  %v5258_v57 = vld [vmem:[#allocation7 + $0x1a8] ss:$16 sps:$4 sm:$0xff]   ;;  %v5259_v58 = vld [vmem:[#allocation7 + $0x1c4] ss:$16 sps:$4 sm:$0xff]   ;;  %v5261_v59 = vld [vmem:[#allocation7 + $0x1cc] ss:$16 sps:$4 sm:$0xff]  }
  0x83   :  { %1545 = vmatprep.mubr.bf16.mxu0 %v4506_v48  ;;  %1709 = vmatprep.mubr.bf16.mxu1 %v4506_v48  ;;  %v5263_v60 = vld [vmem:[#allocation7 + $0x1c0] ss:$16 sps:$4 sm:$0xff]   ;;  %v5264_v61 = vld [vmem:[#allocation7 + $0x1c8] ss:$16 sps:$4 sm:$0xff]   ;;  %v5265_v62 = vld [vmem:[#allocation7 + $0x1e4] ss:$16 sps:$4 sm:$0xff]  }
  0x84   :  { %v5267_v63 = vld [vmem:[#allocation7 + $0x1ec] ss:$16 sps:$4 sm:$0xff]   ;;  %v5269_v0 = vld [vmem:[#allocation7 + $0x1e0] ss:$16 sps:$4 sm:$0xff]   ;;  %v5270_v1 = vld [vmem:[#allocation7 + $0x1e8] ss:$16 sps:$4 sm:$0xff]  }
  0x85   :  { %1524 = vmatpush1.bf16.msra.mxu0 %v5209_v22  ;;  %1688 = vmatpush1.bf16.msra.mxu1 %v5210_v23  ;;  %v5275_v2 = vld [vmem:[#allocation7 + $0x204] ss:$16 sps:$4 sm:$0xff]   ;;  %v5278_v3 = vld [vmem:[#allocation7 + $0x20c] ss:$16 sps:$4 sm:$0xff]   ;;  %v5273_v5 = vld [vmem:[#allocation7 + $0x200] ss:$16 sps:$4 sm:$0xff]  }
  0x86   :  { %1525 = vmatprep.subr.bf16.mxu0 %v5211_v24  ;;  %1689 = vmatprep.subr.bf16.mxu1 %v5213_v25  ;;  %v5276_v6 = vld [vmem:[#allocation7 + $0x208] ss:$16 sps:$4 sm:$0xff]   ;;  %v5281_v7 = vld [vmem:[#allocation7 + $0x224] ss:$16 sps:$4 sm:$0xff]   ;;  %v5284_v8 = vld [vmem:[#allocation7 + $0x22c] ss:$16 sps:$4 sm:$0xff]  }
  0x87   :  { %v5279_v9 = vld [vmem:[#allocation7 + $0x220] ss:$16 sps:$4 sm:$0xff]   ;;  %v5282_v10 = vld [vmem:[#allocation7 + $0x228] ss:$16 sps:$4 sm:$0xff]   ;;  %v5287_v11 = vld [vmem:[#allocation7 + $0x244] ss:$16 sps:$4 sm:$0xff]  }
  0x88   :  { %v5290_v12 = vld [vmem:[#allocation7 + $0x24c] ss:$16 sps:$4 sm:$0xff]   ;;  %v5285_v13 = vld [vmem:[#allocation7 + $0x240] ss:$16 sps:$4 sm:$0xff]   ;;  %v5288_v14 = vld [vmem:[#allocation7 + $0x248] ss:$16 sps:$4 sm:$0xff]  }
  0x89   :  { %1526 = vmatpush1.bf16.msra.mxu0 %v5215_v26  ;;  %1690 = vmatpush1.bf16.msra.mxu1 %v5216_v27  ;;  %v5293_v15 = vld [vmem:[#allocation7 + $0x264] ss:$16 sps:$4 sm:$0xff]   ;;  %v5296_v16 = vld [vmem:[#allocation7 + $0x26c] ss:$16 sps:$4 sm:$0xff]   ;;  %v5291_v17 = vld [vmem:[#allocation7 + $0x260] ss:$16 sps:$4 sm:$0xff]  }
  0x8a   :  { %1527 = vmatprep.subr.bf16.mxu0 %v5217_v28  ;;  %1691 = vmatprep.subr.bf16.mxu1 %v5219_v29  ;;  %v5294_v18 = vld [vmem:[#allocation7 + $0x268] ss:$16 sps:$4 sm:$0xff]   ;;  %v5299_v19 = vld [vmem:[#allocation7 + $0x284] ss:$16 sps:$4 sm:$0xff]   ;;  %v5302_v20 = vld [vmem:[#allocation7 + $0x28c] ss:$16 sps:$4 sm:$0xff]  }
  0x8b   :  { %v5297_v21 = vld [vmem:[#allocation7 + $0x280] ss:$16 sps:$4 sm:$0xff]   ;;  %v5300_v22 = vld [vmem:[#allocation7 + $0x288] ss:$16 sps:$4 sm:$0xff]   ;;  %v5305_v23 = vld [vmem:[#allocation7 + $0x2a4] ss:$16 sps:$4 sm:$0xff]  }
  0x8c   :  { %v5308_v24 = vld [vmem:[#allocation7 + $0x2ac] ss:$16 sps:$4 sm:$0xff]   ;;  %v5303_v25 = vld [vmem:[#allocation7 + $0x2a0] ss:$16 sps:$4 sm:$0xff]   ;;  %v5306_v26 = vld [vmem:[#allocation7 + $0x2a8] ss:$16 sps:$4 sm:$0xff]  }
  0x8d   :  { %1528 = vmatpush1.bf16.msra.mxu0 %v5221_v30  ;;  %1692 = vmatpush1.bf16.msra.mxu1 %v5222_v31  ;;  %v5311_v27 = vld [vmem:[#allocation7 + $0x2c4] ss:$16 sps:$4 sm:$0xff]   ;;  %v5314_v28 = vld [vmem:[#allocation7 + $0x2cc] ss:$16 sps:$4 sm:$0xff]   ;;  %v5309_v31 = vld [vmem:[#allocation7 + $0x2c0] ss:$16 sps:$4 sm:$0xff]  }
  0x8e   :  { %1529 = vmatprep.subr.bf16.mxu0 %v5223_v32  ;;  %1693 = vmatprep.subr.bf16.mxu1 %v5225_v33  ;;  %v6354_v29 = vld [vmem:[#allocation2 + $0x8] sm:$0xff]  ;;  %v5317_v33 = vld [vmem:[#allocation7 + $0x2e4] ss:$16 sps:$4 sm:$0xff]  }
  0x8f   :  { %v4508_v30 = vcombine.high %v6354_v29, %v6354_v29  ;;  %v5312_v32 = vld [vmem:[#allocation7 + $0x2c8] ss:$16 sps:$4 sm:$0xff]   ;;  %v5338_v46 = vld [vmem:[#allocation7 + $0x34c] ss:$16 sps:$4 sm:$0xff]  }
  0x90   :  { %v5336_v48 = vld [vmem:[#allocation7 + $0x348] ss:$16 sps:$4 sm:$0xff]  }
  0x91   :  { %1530 = vmatpush1.bf16.msra.mxu0 %v5227_v34  ;;  %1694 = vmatpush1.bf16.msra.mxu1 %v5228_v35  ;;  %v5320_v34 = vld [vmem:[#allocation7 + $0x2ec] ss:$16 sps:$4 sm:$0xff]   ;;  %v5315_v35 = vld [vmem:[#allocation7 + $0x2e0] ss:$16 sps:$4 sm:$0xff]  }
  0x92   :  { %1531 = vmatprep.subr.bf16.mxu0 %v5229_v36  ;;  %1695 = vmatprep.subr.bf16.mxu1 %v5231_v37  ;;  %v5318_v36 = vld [vmem:[#allocation7 + $0x2e8] ss:$16 sps:$4 sm:$0xff]   ;;  %v5323_v37 = vld [vmem:[#allocation7 + $0x304] ss:$16 sps:$4 sm:$0xff]  }
  0x95   :  { %1532 = vmatpush1.bf16.msra.mxu0 %v5233_v38  ;;  %1696 = vmatpush1.bf16.msra.mxu1 %v5234_v39  ;;  %v5326_v38 = vld [vmem:[#allocation7 + $0x30c] ss:$16 sps:$4 sm:$0xff]   ;;  %v5321_v39 = vld [vmem:[#allocation7 + $0x300] ss:$16 sps:$4 sm:$0xff]  }
  0x96   :  { %1533 = vmatprep.subr.bf16.mxu0 %v5235_v40  ;;  %1697 = vmatprep.subr.bf16.mxu1 %v5237_v41  ;;  %v5324_v40 = vld [vmem:[#allocation7 + $0x308] ss:$16 sps:$4 sm:$0xff]   ;;  %v5329_v41 = vld [vmem:[#allocation7 + $0x324] ss:$16 sps:$4 sm:$0xff]  }
  0x99   :  { %1534 = vmatpush1.bf16.msra.mxu0 %v5239_v42  ;;  %1698 = vmatpush1.bf16.msra.mxu1 %v5240_v43  ;;  %v5332_v42 = vld [vmem:[#allocation7 + $0x32c] ss:$16 sps:$4 sm:$0xff]   ;;  %v5327_v43 = vld [vmem:[#allocation7 + $0x320] ss:$16 sps:$4 sm:$0xff]  }
  0x9a   :  { %1535 = vmatprep.subr.bf16.mxu0 %v5241_v44  ;;  %1699 = vmatprep.subr.bf16.mxu1 %v5243_v45  ;;  %v5330_v44 = vld [vmem:[#allocation7 + $0x328] ss:$16 sps:$4 sm:$0xff]   ;;  %v5335_v45 = vld [vmem:[#allocation7 + $0x344] ss:$16 sps:$4 sm:$0xff]  }
  0x9d   :  { %1536 = vmatpush1.bf16.msra.mxu0 %v5245_v47  ;;  %1700 = vmatpush1.bf16.msra.mxu1 %v5246_v49  ;;  %v5333_v47 = vld [vmem:[#allocation7 + $0x340] ss:$16 sps:$4 sm:$0xff]   ;;  %v5341_v49 = vld [vmem:[#allocation7 + $0x364] ss:$16 sps:$4 sm:$0xff]  }
  0x9e   :  { %1537 = vmatprep.subr.bf16.mxu0 %v5247_v50  ;;  %1701 = vmatprep.subr.bf16.mxu1 %v5249_v51  ;;  %v5344_v50 = vld [vmem:[#allocation7 + $0x36c] ss:$16 sps:$4 sm:$0xff]   ;;  %v5339_v51 = vld [vmem:[#allocation7 + $0x360] ss:$16 sps:$4 sm:$0xff]  }
  0xa1   :  { %1538 = vmatpush1.bf16.msra.mxu0 %v5251_v52  ;;  %1702 = vmatpush1.bf16.msra.mxu1 %v5252_v53  ;;  %v5342_v52 = vld [vmem:[#allocation7 + $0x368] ss:$16 sps:$4 sm:$0xff]   ;;  %v5347_v53 = vld [vmem:[#allocation7 + $0x384] ss:$16 sps:$4 sm:$0xff]  }
  0xa2   :  { %1539 = vmatprep.subr.bf16.mxu0 %v5253_v54  ;;  %1703 = vmatprep.subr.bf16.mxu1 %v5255_v55  ;;  %v5350_v54 = vld [vmem:[#allocation7 + $0x38c] ss:$16 sps:$4 sm:$0xff]   ;;  %v5345_v55 = vld [vmem:[#allocation7 + $0x380] ss:$16 sps:$4 sm:$0xff]  }
  0xa5   :  { %1540 = vmatpush1.bf16.msra.mxu0 %v5257_v56  ;;  %1704 = vmatpush1.bf16.msra.mxu1 %v5258_v57  ;;  %v5348_v56 = vld [vmem:[#allocation7 + $0x388] ss:$16 sps:$4 sm:$0xff]   ;;  %v5353_v57 = vld [vmem:[#allocation7 + $0x3a4] ss:$16 sps:$4 sm:$0xff]  }
  0xa6   :  { %1541 = vmatprep.subr.bf16.mxu0 %v5259_v58  ;;  %1705 = vmatprep.subr.bf16.mxu1 %v5261_v59  ;;  %v5356_v58 = vld [vmem:[#allocation7 + $0x3ac] ss:$16 sps:$4 sm:$0xff]   ;;  %v5351_v59 = vld [vmem:[#allocation7 + $0x3a0] ss:$16 sps:$4 sm:$0xff]  }
  0xa9   :  { %1542 = vmatpush1.bf16.msra.mxu0 %v5263_v60  ;;  %1706 = vmatpush1.bf16.msra.mxu1 %v5264_v61  ;;  %v5354_v60 = vld [vmem:[#allocation7 + $0x3a8] ss:$16 sps:$4 sm:$0xff]   ;;  %v5359_v61 = vld [vmem:[#allocation7 + $0x3c4] ss:$16 sps:$4 sm:$0xff]  }
  0xaa   :  { %1543 = vmatprep.subr.bf16.mxu0 %v5265_v62  ;;  %1707 = vmatprep.subr.bf16.mxu1 %v5267_v63  ;;  %v5362_v62 = vld [vmem:[#allocation7 + $0x3cc] ss:$16 sps:$4 sm:$0xff]   ;;  %v5357_v63 = vld [vmem:[#allocation7 + $0x3c0] ss:$16 sps:$4 sm:$0xff]  }
  0xad   :  { %1544 = vmatpush1.bf16.msra.mxu0 %v5269_v0  ;;  %1708 = vmatpush1.bf16.msra.mxu1 %v5270_v1  ;;  %v5360_v0 = vld [vmem:[#allocation7 + $0x3c8] ss:$16 sps:$4 sm:$0xff]   ;;  %v5365_v1 = vld [vmem:[#allocation7 + $0x3e4] ss:$16 sps:$4 sm:$0xff]  }
  0xae   :  { %1554 = vmatprep.subr.bf16.mxu0 %v5275_v2  ;;  %1718 = vmatprep.subr.bf16.mxu1 %v5278_v3  ;;  %v5368_v2 = vld [vmem:[#allocation7 + $0x3ec] ss:$16 sps:$4 sm:$0xff]   ;;  %v5363_v3 = vld [vmem:[#allocation7 + $0x3e0] ss:$16 sps:$4 sm:$0xff]  }
  0xb0   :  { %1546 = vmatmul.mubr.bf16.vlgmr.msra.gmra.mrb[0].mxu0 %v4505_v4  ;;  %1710 = vmatmul.mubr.bf16.vlgmr.msra.gmra.mrb[0].mxu1 %v4505_v4  ;;  %v5366_v4 = vld [vmem:[#allocation7 + $0x3e8] ss:$16 sps:$4 sm:$0xff]  }
  0xb1   :  { %1555 = vmatpush1.bf16.msra.mxu0 %v5273_v5  ;;  %1719 = vmatpush1.bf16.msra.mxu1 %v5276_v6  ;;  %v5373_v5 = vld [vmem:[#allocation7 + $0x404] ss:$16 sps:$4 sm:$0xff]   ;;  %v5376_v6 = vld [vmem:[#allocation7 + $0x40c] ss:$16 sps:$4 sm:$0xff]  }
  0xb2   :  { %1556 = vmatprep.subr.bf16.mxu0 %v5281_v7  ;;  %1720 = vmatprep.subr.bf16.mxu1 %v5284_v8  ;;  %v4507_v7 = vcombine.low %v6354_v29, %v6354_v29  ;;  %v5371_v8 = vld [vmem:[#allocation7 + $0x400] ss:$16 sps:$4 sm:$0xff]   ;;  %v5406_v29 = vld [vmem:[#allocation7 + $0x4ac] ss:$16 sps:$4 sm:$0xff]  }
  0xb3   :  { %1586 = vmatprep.mubr.bf16.mxu0 %v4508_v30  ;;  %1750 = vmatprep.mubr.bf16.mxu1 %v4508_v30  ;;  %v5401_v30 = vld [vmem:[#allocation7 + $0x4a0] ss:$16 sps:$4 sm:$0xff]  }
  0xb5   :  { %1557 = vmatpush1.bf16.msra.mxu0 %v5279_v9  ;;  %1721 = vmatpush1.bf16.msra.mxu1 %v5282_v10  ;;  %v5374_v9 = vld [vmem:[#allocation7 + $0x408] ss:$16 sps:$4 sm:$0xff]   ;;  %v5379_v10 = vld [vmem:[#allocation7 + $0x424] ss:$16 sps:$4 sm:$0xff]  }
  0xb6   :  { %1558 = vmatprep.subr.bf16.mxu0 %v5287_v11  ;;  %1722 = vmatprep.subr.bf16.mxu1 %v5290_v12  ;;  %v6360_v11 = vld [vmem:[#allocation2 + $0x10] sm:$0xff]  ;;  %v5382_v12 = vld [vmem:[#allocation7 + $0x42c] ss:$16 sps:$4 sm:$0xff]  }
  0xb9   :  { %1559 = vmatpush1.bf16.msra.mxu0 %v5285_v13  ;;  %1723 = vmatpush1.bf16.msra.mxu1 %v5288_v14  ;;  %v4510_v13 = vcombine.high %v6360_v11, %v6360_v11  ;;  %v5377_v14 = vld [vmem:[#allocation7 + $0x420] ss:$16 sps:$4 sm:$0xff]  }
  0xba   :  { %1560 = vmatprep.subr.bf16.mxu0 %v5293_v15  ;;  %1724 = vmatprep.subr.bf16.mxu1 %v5296_v16  ;;  %v5380_v15 = vld [vmem:[#allocation7 + $0x428] ss:$16 sps:$4 sm:$0xff]   ;;  %v5385_v16 = vld [vmem:[#allocation7 + $0x444] ss:$16 sps:$4 sm:$0xff]  }
  0xbd   :  { %1561 = vmatpush1.bf16.msra.mxu0 %v5291_v17  ;;  %1725 = vmatpush1.bf16.msra.mxu1 %v5294_v18  ;;  %v5388_v17 = vld [vmem:[#allocation7 + $0x44c] ss:$16 sps:$4 sm:$0xff]   ;;  %v5383_v18 = vld [vmem:[#allocation7 + $0x440] ss:$16 sps:$4 sm:$0xff]  }
  0xbe   :  { %1562 = vmatprep.subr.bf16.mxu0 %v5299_v19  ;;  %1726 = vmatprep.subr.bf16.mxu1 %v5302_v20  ;;  %v5386_v19 = vld [vmem:[#allocation7 + $0x448] ss:$16 sps:$4 sm:$0xff]   ;;  %v5391_v20 = vld [vmem:[#allocation7 + $0x464] ss:$16 sps:$4 sm:$0xff]  }
  0xc1   :  { %1563 = vmatpush1.bf16.msra.mxu0 %v5297_v21  ;;  %1727 = vmatpush1.bf16.msra.mxu1 %v5300_v22  ;;  %v5394_v21 = vld [vmem:[#allocation7 + $0x46c] ss:$16 sps:$4 sm:$0xff]   ;;  %v5389_v22 = vld [vmem:[#allocation7 + $0x460] ss:$16 sps:$4 sm:$0xff]  }
  0xc2   :  { %1564 = vmatprep.subr.bf16.mxu0 %v5305_v23  ;;  %1728 = vmatprep.subr.bf16.mxu1 %v5308_v24  ;;  %v5392_v23 = vld [vmem:[#allocation7 + $0x468] ss:$16 sps:$4 sm:$0xff]   ;;  %v5397_v24 = vld [vmem:[#allocation7 + $0x484] ss:$16 sps:$4 sm:$0xff]  }
  0xc5   :  { %1565 = vmatpush1.bf16.msra.mxu0 %v5303_v25  ;;  %1729 = vmatpush1.bf16.msra.mxu1 %v5306_v26  ;;  %v5400_v25 = vld [vmem:[#allocation7 + $0x48c] ss:$16 sps:$4 sm:$0xff]   ;;  %v5395_v26 = vld [vmem:[#allocation7 + $0x480] ss:$16 sps:$4 sm:$0xff]  }
  0xc6   :  { %1566 = vmatprep.subr.bf16.mxu0 %v5311_v27  ;;  %1730 = vmatprep.subr.bf16.mxu1 %v5314_v28  ;;  %v5398_v27 = vld [vmem:[#allocation7 + $0x488] ss:$16 sps:$4 sm:$0xff]   ;;  %v5403_v28 = vld [vmem:[#allocation7 + $0x4a4] ss:$16 sps:$4 sm:$0xff]  }
  0xc9   :  { %1567 = vmatpush1.bf16.msra.mxu0 %v5309_v31  ;;  %1731 = vmatpush1.bf16.msra.mxu1 %v5312_v32  ;;  %v5404_v31 = vld [vmem:[#allocation7 + $0x4a8] ss:$16 sps:$4 sm:$0xff]   ;;  %v5409_v32 = vld [vmem:[#allocation7 + $0x4c4] ss:$16 sps:$4 sm:$0xff]  }
  0xca   :  { %1568 = vmatprep.subr.bf16.mxu0 %v5317_v33  ;;  %1732 = vmatprep.subr.bf16.mxu1 %v5320_v34  ;;  %v5412_v33 = vld [vmem:[#allocation7 + $0x4cc] ss:$16 sps:$4 sm:$0xff]   ;;  %v5407_v34 = vld [vmem:[#allocation7 + $0x4c0] ss:$16 sps:$4 sm:$0xff]  }
  0xcd   :  { %1569 = vmatpush1.bf16.msra.mxu0 %v5315_v35  ;;  %1733 = vmatpush1.bf16.msra.mxu1 %v5318_v36  ;;  %v5410_v35 = vld [vmem:[#allocation7 + $0x4c8] ss:$16 sps:$4 sm:$0xff]   ;;  %v5415_v36 = vld [vmem:[#allocation7 + $0x4e4] ss:$16 sps:$4 sm:$0xff]  }
  0xce   :  { %1570 = vmatprep.subr.bf16.mxu0 %v5323_v37  ;;  %1734 = vmatprep.subr.bf16.mxu1 %v5326_v38  ;;  %v5418_v37 = vld [vmem:[#allocation7 + $0x4ec] ss:$16 sps:$4 sm:$0xff]   ;;  %v5413_v38 = vld [vmem:[#allocation7 + $0x4e0] ss:$16 sps:$4 sm:$0xff]  }
  0xd1   :  { %1571 = vmatpush1.bf16.msra.mxu0 %v5321_v39  ;;  %1735 = vmatpush1.bf16.msra.mxu1 %v5324_v40  ;;  %v5416_v39 = vld [vmem:[#allocation7 + $0x4e8] ss:$16 sps:$4 sm:$0xff]   ;;  %v5421_v40 = vld [vmem:[#allocation7 + $0x504] ss:$16 sps:$4 sm:$0xff]  }
  0xd2   :  { %1572 = vmatprep.subr.bf16.mxu0 %v5329_v41  ;;  %1736 = vmatprep.subr.bf16.mxu1 %v5332_v42  ;;  %v5424_v41 = vld [vmem:[#allocation7 + $0x50c] ss:$16 sps:$4 sm:$0xff]   ;;  %v5419_v42 = vld [vmem:[#allocation7 + $0x500] ss:$16 sps:$4 sm:$0xff]  }
  0xd5   :  { %1573 = vmatpush1.bf16.msra.mxu0 %v5327_v43  ;;  %1737 = vmatpush1.bf16.msra.mxu1 %v5330_v44  ;;  %v5422_v43 = vld [vmem:[#allocation7 + $0x508] ss:$16 sps:$4 sm:$0xff]   ;;  %v5427_v44 = vld [vmem:[#allocation7 + $0x524] ss:$16 sps:$4 sm:$0xff]  }
  0xd6   :  { %1574 = vmatprep.subr.bf16.mxu0 %v5335_v45  ;;  %1738 = vmatprep.subr.bf16.mxu1 %v5338_v46  ;;  %v5430_v45 = vld [vmem:[#allocation7 + $0x52c] ss:$16 sps:$4 sm:$0xff]   ;;  %v5425_v46 = vld [vmem:[#allocation7 + $0x520] ss:$16 sps:$4 sm:$0xff]  }
  0xd9   :  { %1575 = vmatpush1.bf16.msra.mxu0 %v5333_v47  ;;  %1739 = vmatpush1.bf16.msra.mxu1 %v5336_v48  ;;  %v5428_v47 = vld [vmem:[#allocation7 + $0x528] ss:$16 sps:$4 sm:$0xff]   ;;  %v5433_v48 = vld [vmem:[#allocation7 + $0x544] ss:$16 sps:$4 sm:$0xff]  }
  0xda   :  { %1576 = vmatprep.subr.bf16.mxu0 %v5341_v49  ;;  %1740 = vmatprep.subr.bf16.mxu1 %v5344_v50  ;;  %v5436_v49 = vld [vmem:[#allocation7 + $0x54c] ss:$16 sps:$4 sm:$0xff]   ;;  %v5431_v50 = vld [vmem:[#allocation7 + $0x540] ss:$16 sps:$4 sm:$0xff]  }
  0xdd   :  { %1577 = vmatpush1.bf16.msra.mxu0 %v5339_v51  ;;  %1741 = vmatpush1.bf16.msra.mxu1 %v5342_v52  ;;  %v5434_v51 = vld [vmem:[#allocation7 + $0x548] ss:$16 sps:$4 sm:$0xff]   ;;  %v5439_v52 = vld [vmem:[#allocation7 + $0x564] ss:$16 sps:$4 sm:$0xff]  }
  0xde   :  { %1578 = vmatprep.subr.bf16.mxu0 %v5347_v53  ;;  %1742 = vmatprep.subr.bf16.mxu1 %v5350_v54  ;;  %v5442_v53 = vld [vmem:[#allocation7 + $0x56c] ss:$16 sps:$4 sm:$0xff]   ;;  %v5437_v54 = vld [vmem:[#allocation7 + $0x560] ss:$16 sps:$4 sm:$0xff]  }
  0xe1   :  { %1579 = vmatpush1.bf16.msra.mxu0 %v5345_v55  ;;  %1743 = vmatpush1.bf16.msra.mxu1 %v5348_v56  ;;  %v5440_v55 = vld [vmem:[#allocation7 + $0x568] ss:$16 sps:$4 sm:$0xff]   ;;  %v5445_v56 = vld [vmem:[#allocation7 + $0x584] ss:$16 sps:$4 sm:$0xff]  }
  0xe2   :  { %1580 = vmatprep.subr.bf16.mxu0 %v5353_v57  ;;  %1744 = vmatprep.subr.bf16.mxu1 %v5356_v58  ;;  %v5448_v57 = vld [vmem:[#allocation7 + $0x58c] ss:$16 sps:$4 sm:$0xff]   ;;  %v5443_v58 = vld [vmem:[#allocation7 + $0x580] ss:$16 sps:$4 sm:$0xff]  }
  0xe5   :  { %1581 = vmatpush1.bf16.msra.mxu0 %v5351_v59  ;;  %1745 = vmatpush1.bf16.msra.mxu1 %v5354_v60  ;;  %v5446_v59 = vld [vmem:[#allocation7 + $0x588] ss:$16 sps:$4 sm:$0xff]   ;;  %v5451_v60 = vld [vmem:[#allocation7 + $0x5a4] ss:$16 sps:$4 sm:$0xff]  }
  0xe6   :  { %1582 = vmatprep.subr.bf16.mxu0 %v5359_v61  ;;  %1746 = vmatprep.subr.bf16.mxu1 %v5362_v62  ;;  %v5454_v61 = vld [vmem:[#allocation7 + $0x5ac] ss:$16 sps:$4 sm:$0xff]   ;;  %v5449_v62 = vld [vmem:[#allocation7 + $0x5a0] ss:$16 sps:$4 sm:$0xff]  }
  0xe9   :  { %1583 = vmatpush1.bf16.msra.mxu0 %v5357_v63  ;;  %1747 = vmatpush1.bf16.msra.mxu1 %v5360_v0  ;;  %v5452_v63 = vld [vmem:[#allocation7 + $0x5a8] ss:$16 sps:$4 sm:$0xff]   ;;  %v5457_v0 = vld [vmem:[#allocation7 + $0x5c4] ss:$16 sps:$4 sm:$0xff]  }
  0xea   :  { %1584 = vmatprep.subr.bf16.mxu0 %v5365_v1  ;;  %1748 = vmatprep.subr.bf16.mxu1 %v5368_v2  ;;  %v5460_v1 = vld [vmem:[#allocation7 + $0x5cc] ss:$16 sps:$4 sm:$0xff]   ;;  %v5455_v2 = vld [vmem:[#allocation7 + $0x5c0] ss:$16 sps:$4 sm:$0xff]  }
  0xed   :  { %1585 = vmatpush1.bf16.msra.mxu0 %v5363_v3  ;;  %1749 = vmatpush1.bf16.msra.mxu1 %v5366_v4  ;;  %v5458_v3 = vld [vmem:[#allocation7 + $0x5c8] ss:$16 sps:$4 sm:$0xff]   ;;  %v5463_v4 = vld [vmem:[#allocation7 + $0x5e4] ss:$16 sps:$4 sm:$0xff]  }
  0xee   :  { %1595 = vmatprep.subr.bf16.mxu0 %v5373_v5  ;;  %1759 = vmatprep.subr.bf16.mxu1 %v5376_v6  ;;  %v5466_v5 = vld [vmem:[#allocation7 + $0x5ec] ss:$16 sps:$4 sm:$0xff]   ;;  %v5461_v6 = vld [vmem:[#allocation7 + $0x5e0] ss:$16 sps:$4 sm:$0xff]  }
  0xf0   :  { %1587 = vmatmul.mubr.bf16.vlgmr.msra.gmra.mrb[0].mxu0 %v4507_v7  ;;  %1751 = vmatmul.mubr.bf16.vlgmr.msra.gmra.mrb[0].mxu1 %v4507_v7  ;;  %v5464_v7 = vld [vmem:[#allocation7 + $0x5e8] ss:$16 sps:$4 sm:$0xff]  }
  0xf1   :  { %1596 = vmatpush1.bf16.msra.mxu0 %v5371_v8  ;;  %1760 = vmatpush1.bf16.msra.mxu1 %v5374_v9  ;;  %v5471_v8 = vld [vmem:[#allocation7 + $0x604] ss:$16 sps:$4 sm:$0xff]   ;;  %v5474_v9 = vld [vmem:[#allocation7 + $0x60c] ss:$16 sps:$4 sm:$0xff]  }
  0xf2   :  { %1597 = vmatprep.subr.bf16.mxu0 %v5379_v10  ;;  %1761 = vmatprep.subr.bf16.mxu1 %v5382_v12  ;;  %v5469_v10 = vld [vmem:[#allocation7 + $0x600] ss:$16 sps:$4 sm:$0xff]   ;;  %v5472_v12 = vld [vmem:[#allocation7 + $0x608] ss:$16 sps:$4 sm:$0xff]  }
  0xf3   :  { %1627 = vmatprep.mubr.bf16.mxu0 %v4510_v13  ;;  %1791 = vmatprep.mubr.bf16.mxu1 %v4510_v13  ;;  %v4509_v13 = vcombine.low %v6360_v11, %v6360_v11  ;;  %v5489_v11 = vld [vmem:[#allocation7 + $0x664] ss:$16 sps:$4 sm:$0xff]  }
  0xf5   :  { %1598 = vmatpush1.bf16.msra.mxu0 %v5377_v14  ;;  %1762 = vmatpush1.bf16.msra.mxu1 %v5380_v15  ;;  %v5477_v14 = vld [vmem:[#allocation7 + $0x624] ss:$16 sps:$4 sm:$0xff]   ;;  %v5480_v15 = vld [vmem:[#allocation7 + $0x62c] ss:$16 sps:$4 sm:$0xff]  }
  0xf6   :  { %1599 = vmatprep.subr.bf16.mxu0 %v5385_v16  ;;  %1763 = vmatprep.subr.bf16.mxu1 %v5388_v17  ;;  %v5475_v16 = vld [vmem:[#allocation7 + $0x620] ss:$16 sps:$4 sm:$0xff]   ;;  %v5478_v17 = vld [vmem:[#allocation7 + $0x628] ss:$16 sps:$4 sm:$0xff]  }
  0xf9   :  { %1600 = vmatpush1.bf16.msra.mxu0 %v5383_v18  ;;  %1764 = vmatpush1.bf16.msra.mxu1 %v5386_v19  ;;  %v5483_v18 = vld [vmem:[#allocation7 + $0x644] ss:$16 sps:$4 sm:$0xff]   ;;  %v5486_v19 = vld [vmem:[#allocation7 + $0x64c] ss:$16 sps:$4 sm:$0xff]  }
  0xfa   :  { %1601 = vmatprep.subr.bf16.mxu0 %v5391_v20  ;;  %1765 = vmatprep.subr.bf16.mxu1 %v5394_v21  ;;  %v5481_v20 = vld [vmem:[#allocation7 + $0x640] ss:$16 sps:$4 sm:$0xff]   ;;  %v5484_v21 = vld [vmem:[#allocation7 + $0x648] ss:$16 sps:$4 sm:$0xff]  }
  0xfd   :  { %1602 = vmatpush1.bf16.msra.mxu0 %v5389_v22  ;;  %1766 = vmatpush1.bf16.msra.mxu1 %v5392_v23  ;;  %v6198_v22 = vmov 0   ;;  %v5492_v23 = vld [vmem:[#allocation7 + $0x66c] ss:$16 sps:$4 sm:$0xff]  }
  0xfe   :  { %1603 = vmatprep.subr.bf16.mxu0 %v5397_v24  ;;  %1767 = vmatprep.subr.bf16.mxu1 %v5400_v25  ;;  %v5487_v24 = vld [vmem:[#allocation7 + $0x660] ss:$16 sps:$4 sm:$0xff]   ;;  %v5490_v25 = vld [vmem:[#allocation7 + $0x668] ss:$16 sps:$4 sm:$0xff]  }
 0x101   :  { %1604 = vmatpush1.bf16.msra.mxu0 %v5395_v26  ;;  %1768 = vmatpush1.bf16.msra.mxu1 %v5398_v27  ;;  %v5495_v26 = vld [vmem:[#allocation7 + $0x684] ss:$16 sps:$4 sm:$0xff]   ;;  %v5498_v27 = vld [vmem:[#allocation7 + $0x68c] ss:$16 sps:$4 sm:$0xff]  }
 0x102   :  { %1605 = vmatprep.subr.bf16.mxu0 %v5403_v28  ;;  %1769 = vmatprep.subr.bf16.mxu1 %v5406_v29  ;;  %v5493_v28 = vld [vmem:[#allocation7 + $0x680] ss:$16 sps:$4 sm:$0xff]   ;;  %v5496_v29 = vld [vmem:[#allocation7 + $0x688] ss:$16 sps:$4 sm:$0xff]  }
 0x105   :  { %1606 = vmatpush1.bf16.msra.mxu0 %v5401_v30  ;;  %1770 = vmatpush1.bf16.msra.mxu1 %v5404_v31  ;;  %v5501_v30 = vld [vmem:[#allocation7 + $0x6a4] ss:$16 sps:$4 sm:$0xff]   ;;  %v5504_v31 = vld [vmem:[#allocation7 + $0x6ac] ss:$16 sps:$4 sm:$0xff]  }
 0x106   :  { %1607 = vmatprep.subr.bf16.mxu0 %v5409_v32  ;;  %1771 = vmatprep.subr.bf16.mxu1 %v5412_v33  ;;  %v5499_v32 = vld [vmem:[#allocation7 + $0x6a0] ss:$16 sps:$4 sm:$0xff]   ;;  %v5502_v33 = vld [vmem:[#allocation7 + $0x6a8] ss:$16 sps:$4 sm:$0xff]  }
 0x109   :  { %1608 = vmatpush1.bf16.msra.mxu0 %v5407_v34  ;;  %1772 = vmatpush1.bf16.msra.mxu1 %v5410_v35  ;;  %v5507_v34 = vld [vmem:[#allocation7 + $0x6c4] ss:$16 sps:$4 sm:$0xff]   ;;  %v5510_v35 = vld [vmem:[#allocation7 + $0x6cc] ss:$16 sps:$4 sm:$0xff]  }
 0x10a   :  { %1609 = vmatprep.subr.bf16.mxu0 %v5415_v36  ;;  %1773 = vmatprep.subr.bf16.mxu1 %v5418_v37  ;;  %v5505_v36 = vld [vmem:[#allocation7 + $0x6c0] ss:$16 sps:$4 sm:$0xff]   ;;  %v5508_v37 = vld [vmem:[#allocation7 + $0x6c8] ss:$16 sps:$4 sm:$0xff]  }
 0x10d   :  { %1610 = vmatpush1.bf16.msra.mxu0 %v5413_v38  ;;  %1774 = vmatpush1.bf16.msra.mxu1 %v5416_v39  ;;  %v5513_v38 = vld [vmem:[#allocation7 + $0x6e4] ss:$16 sps:$4 sm:$0xff]   ;;  %v5516_v39 = vld [vmem:[#allocation7 + $0x6ec] ss:$16 sps:$4 sm:$0xff]  }
 0x10e   :  { %1611 = vmatprep.subr.bf16.mxu0 %v5421_v40  ;;  %1775 = vmatprep.subr.bf16.mxu1 %v5424_v41  ;;  %v5511_v40 = vld [vmem:[#allocation7 + $0x6e0] ss:$16 sps:$4 sm:$0xff]   ;;  %v5514_v41 = vld [vmem:[#allocation7 + $0x6e8] ss:$16 sps:$4 sm:$0xff]  }
 0x111   :  { %1612 = vmatpush1.bf16.msra.mxu0 %v5419_v42  ;;  %1776 = vmatpush1.bf16.msra.mxu1 %v5422_v43  ;;  %v5520_v42 = vld [vmem:[#allocation8 + $0x4] ss:$8 sps:$4 sm:$0xff]   ;;  %v5517_v43 = vld [vmem:[#allocation2 + $0x18] ss:$0 sps:$4 sm:$0xff]  }
 0x112   :  { %1613 = vmatprep.subr.bf16.mxu0 %v5427_v44  ;;  %1777 = vmatprep.subr.bf16.mxu1 %v5430_v45  ;;  %v5518_v44 = vld [vmem:[#allocation8] ss:$8 sps:$4 sm:$0xff]   ;;  %v5523_v45 = vld [vmem:[#allocation8 + $0x14] ss:$8 sps:$4 sm:$0xff]  }
 0x115   :  { %1614 = vmatpush1.bf16.msra.mxu0 %v5425_v46  ;;  %1778 = vmatpush1.bf16.msra.mxu1 %v5428_v47  ;;  %v5521_v46 = vld [vmem:[#allocation8 + $0x10] ss:$8 sps:$4 sm:$0xff]   ;;  %v5526_v47 = vld [vmem:[#allocation8 + $0x24] ss:$8 sps:$4 sm:$0xff]  }
 0x116   :  { %1615 = vmatprep.subr.bf16.mxu0 %v5433_v48  ;;  %1779 = vmatprep.subr.bf16.mxu1 %v5436_v49  ;;  %v5524_v48 = vld [vmem:[#allocation8 + $0x20] ss:$8 sps:$4 sm:$0xff]   ;;  %v5529_v49 = vld [vmem:[#allocation8 + $0x34] ss:$8 sps:$4 sm:$0xff]  }
 0x119   :  { %1616 = vmatpush1.bf16.msra.mxu0 %v5431_v50  ;;  %1780 = vmatpush1.bf16.msra.mxu1 %v5434_v51  ;;  %v5527_v50 = vld [vmem:[#allocation8 + $0x30] ss:$8 sps:$4 sm:$0xff]   ;;  %v5532_v51 = vld [vmem:[#allocation8 + $0x44] ss:$8 sps:$4 sm:$0xff]  }
 0x11a   :  { %1617 = vmatprep.subr.bf16.mxu0 %v5439_v52  ;;  %1781 = vmatprep.subr.bf16.mxu1 %v5442_v53  ;;  %v5530_v52 = vld [vmem:[#allocation8 + $0x40] ss:$8 sps:$4 sm:$0xff]   ;;  %v5535_v53 = vld [vmem:[#allocation8 + $0x54] ss:$8 sps:$4 sm:$0xff]  }
 0x11d   :  { %1618 = vmatpush1.bf16.msra.mxu0 %v5437_v54  ;;  %1782 = vmatpush1.bf16.msra.mxu1 %v5440_v55  ;;  %v5533_v54 = vld [vmem:[#allocation8 + $0x50] ss:$8 sps:$4 sm:$0xff]   ;;  %v5538_v55 = vld [vmem:[#allocation8 + $0x64] ss:$8 sps:$4 sm:$0xff]  }
 0x11e   :  { %1619 = vmatprep.subr.bf16.mxu0 %v5445_v56  ;;  %1783 = vmatprep.subr.bf16.mxu1 %v5448_v57  ;;  %v5536_v56 = vld [vmem:[#allocation8 + $0x60] ss:$8 sps:$4 sm:$0xff]   ;;  %v5541_v57 = vld [vmem:[#allocation8 + $0x74] ss:$8 sps:$4 sm:$0xff]  }
 0x121   :  { %1620 = vmatpush1.bf16.msra.mxu0 %v5443_v58  ;;  %1784 = vmatpush1.bf16.msra.mxu1 %v5446_v59  ;;  %v5539_v58 = vld [vmem:[#allocation8 + $0x70] ss:$8 sps:$4 sm:$0xff]   ;;  %v5544_v59 = vld [vmem:[#allocation8 + $0x84] ss:$8 sps:$4 sm:$0xff]  }
 0x122   :  { %1621 = vmatprep.subr.bf16.mxu0 %v5451_v60  ;;  %1785 = vmatprep.subr.bf16.mxu1 %v5454_v61  ;;  %v5542_v60 = vld [vmem:[#allocation8 + $0x80] ss:$8 sps:$4 sm:$0xff]   ;;  %v5547_v61 = vld [vmem:[#allocation8 + $0x94] ss:$8 sps:$4 sm:$0xff]  }
 0x125   :  { %1622 = vmatpush1.bf16.msra.mxu0 %v5449_v62  ;;  %1786 = vmatpush1.bf16.msra.mxu1 %v5452_v63  ;;  %v5545_v62 = vld [vmem:[#allocation8 + $0x90] ss:$8 sps:$4 sm:$0xff]   ;;  %v5550_v63 = vld [vmem:[#allocation8 + $0xa4] ss:$8 sps:$4 sm:$0xff]  }
 0x126   :  { %1623 = vmatprep.subr.bf16.mxu0 %v5457_v0  ;;  %1787 = vmatprep.subr.bf16.mxu1 %v5460_v1  ;;  %v5548_v0 = vld [vmem:[#allocation8 + $0xa0] ss:$8 sps:$4 sm:$0xff]   ;;  %v5553_v1 = vld [vmem:[#allocation8 + $0xb4] ss:$8 sps:$4 sm:$0xff]  }
 0x129   :  { %1624 = vmatpush1.bf16.msra.mxu0 %v5455_v2  ;;  %1788 = vmatpush1.bf16.msra.mxu1 %v5458_v3  ;;  %v5551_v2 = vld [vmem:[#allocation8 + $0xb0] ss:$8 sps:$4 sm:$0xff]   ;;  %v5556_v3 = vld [vmem:[#allocation8 + $0xc4] ss:$8 sps:$4 sm:$0xff]  }
 0x12a   :  { %1625 = vmatprep.subr.bf16.mxu0 %v5463_v4  ;;  %1789 = vmatprep.subr.bf16.mxu1 %v5466_v5  ;;  %v5554_v4 = vld [vmem:[#allocation8 + $0xc0] ss:$8 sps:$4 sm:$0xff]   ;;  %v5559_v5 = vld [vmem:[#allocation8 + $0xd4] ss:$8 sps:$4 sm:$0xff]  }
 0x12d   :  { %1626 = vmatpush1.bf16.msra.mxu0 %v5461_v6  ;;  %1790 = vmatpush1.bf16.msra.mxu1 %v5464_v7  ;;  %v5557_v6 = vld [vmem:[#allocation8 + $0xd0] ss:$8 sps:$4 sm:$0xff]   ;;  %v5562_v7 = vld [vmem:[#allocation8 + $0xe4] ss:$8 sps:$4 sm:$0xff]  }
 0x12e   :  { %1636 = vmatprep.subr.bf16.mxu0 %v5471_v8  ;;  %1800 = vmatprep.subr.bf16.mxu1 %v5474_v9  ;;  %v5560_v8 = vld [vmem:[#allocation8 + $0xe0] ss:$8 sps:$4 sm:$0xff]   ;;  %v5565_v9 = vld [vmem:[#allocation8 + $0xf4] ss:$8 sps:$4 sm:$0xff]  }
 0x130   :  { %1628 = vmatmul.mubr.bf16.vlgmr.msra.gmra.mrb[0].mxu0 %v4509_v13  ;;  %1792 = vmatmul.mubr.bf16.vlgmr.msra.gmra.mrb[0].mxu1 %v4509_v13  ;;  %v5614_v13 = vld [vmem:[#allocation10] ss:$16 sps:$4 sm:$0xff]  }
 0x131   :  { %1637 = vmatpush1.bf16.msra.mxu0 %v5469_v10  ;;  %1801 = vmatpush1.bf16.msra.mxu1 %v5472_v12  ;;  %v5563_v10 = vld [vmem:[#allocation8 + $0xf0] ss:$8 sps:$4 sm:$0xff]   ;;  %v5568_v12 = vld [vmem:[#allocation8 + $0x104] ss:$8 sps:$4 sm:$0xff]  }
 0x132   :  { %1638 = vmatprep.subr.bf16.mxu0 %v5477_v14  ;;  %1802 = vmatprep.subr.bf16.mxu1 %v5480_v15  ;;  %v5616_v14 = vld [vmem:[#allocation10 + $0x4] ss:$16 sps:$4 sm:$0xff]  }
 0x133   :  { %1668 = vmatprep.mubr.bf16.mxu0 %v6198_v22  ;;  %1832 = vmatprep.mubr.bf16.mxu1 %v6198_v22  ;;  %v5619_v15 = vld [vmem:[#allocation10 + $0x24] ss:$16 sps:$4 sm:$0xff]  }
 0x135   :  { %1639 = vmatpush1.bf16.msra.mxu0 %v5475_v16  ;;  %1803 = vmatpush1.bf16.msra.mxu1 %v5478_v17  ;;  %v5617_v16 = vld [vmem:[#allocation10 + $0x20] ss:$16 sps:$4 sm:$0xff]   ;;  %v348_v17 = vlaneseq }
 0x136   :  { %1640 = vmatprep.subr.bf16.mxu0 %v5483_v18  ;;  %1804 = vmatprep.subr.bf16.mxu1 %v5486_v19 }
 0x137   :  { %v6369_v18 = vshrl.u32 %v348_v17, 7  ;;  %v5620_v17 = vld [vmem:[#allocation10 + $0x40] ss:$16 sps:$4 sm:$0xff]  }
 0x139   :  { %1641 = vmatpush1.bf16.msra.mxu0 %v5481_v20  ;;  %1805 = vmatpush1.bf16.msra.mxu1 %v5484_v21  ;;  %v6372_v19 = vsub.s32 0, %v6369_v18  ;;  %v6377_v20 = vld [vmem:[%s6491_s3] sm:$0xf]  ;;  %v6380_v21 = vsub.s32 1, %v6369_v18 }
 0x13a   :  { %1642 = vmatprep.subr.bf16.mxu0 %v5489_v11  ;;  %1806 = vmatprep.subr.bf16.mxu1 %v5492_v23  ;;  %v6383_v11 = vsub.s32 3, %v6369_v18 }
 0x13b   :  { %v351_v23 = vrot.slane %v6377_v20, %v6372_v19 }
 0x13d   :  { %1643 = vmatpush1.bf16.msra.mxu0 %v5487_v24  ;;  %1807 = vmatpush1.bf16.msra.mxu1 %v5490_v25  ;;  %v355_v24 = vrot.slane %v6377_v20, %v6380_v21  ;;  %v363_v25 = vrot.slane %v6377_v20, %v6383_v11 }
 0x13e   :  { %1644 = vmatprep.subr.bf16.mxu0 %v5495_v26  ;;  %1808 = vmatprep.subr.bf16.mxu1 %v5498_v27 }
 0x141   :  { %1645 = vmatpush1.bf16.msra.mxu0 %v5493_v28  ;;  %1809 = vmatpush1.bf16.msra.mxu1 %v5496_v29 }
 0x142   :  { %1646 = vmatprep.subr.bf16.mxu0 %v5501_v30  ;;  %1810 = vmatprep.subr.bf16.mxu1 %v5504_v31 }
 0x145   :  { %1647 = vmatpush1.bf16.msra.mxu0 %v5499_v32  ;;  %1811 = vmatpush1.bf16.msra.mxu1 %v5502_v33 }
 0x146   :  { %1648 = vmatprep.subr.bf16.mxu0 %v5507_v34  ;;  %1812 = vmatprep.subr.bf16.mxu1 %v5510_v35 }
 0x149   :  { %1649 = vmatpush1.bf16.msra.mxu0 %v5505_v36  ;;  %1813 = vmatpush1.bf16.msra.mxu1 %v5508_v37 }
 0x14a   :  { %1650 = vmatprep.subr.bf16.mxu0 %v5513_v38  ;;  %1814 = vmatprep.subr.bf16.mxu1 %v5516_v39 }
 0x14d   :  { %1651 = vmatpush1.bf16.msra.mxu0 %v5511_v40  ;;  %1815 = vmatpush1.bf16.msra.mxu1 %v5514_v41  ;;  %v5566_v41 = vld [vmem:[#allocation8 + $0x100] ss:$8 sps:$4 sm:$0xff]  }
 0x14e   :  { %2245 = vmatprep.subr.bf16.mxu0 %v5520_v42  ;;  %2549 = vmatprep.subr.bf16.mxu1 %v5616_v14 }
 0x150   :  { %1669 = vmatmul.mubr.bf16.vlgmr.msra.gmra.mrb[0].mxu0 %v5517_v43  ;;  %1833 = vmatmul.mubr.bf16.vlgmr.msra.gmra.mrb[0].mxu1 %v5517_v43  ;;  %v5571_v43 = vld [vmem:[#allocation8 + $0x114] ss:$8 sps:$4 sm:$0xff]  }
 0x151   :  { %2246 = vmatpush1.bf16.msra.mxu0 %v5518_v44  ;;  %2581 = vmatprep.mubr.bf16.mxu1 %v6198_v22 }
 0x152   :  { %2247 = vmatprep.subr.bf16.mxu0 %v5523_v45  ;;  %2550 = vmatpush1.bf16.msra.mxu1 %v5614_v13  ;;  %v5569_v45 = vld [vmem:[#allocation8 + $0x110] ss:$8 sps:$4 sm:$0xff]  }
 0x153   :  { %2551 = vmatprep.subr.bf16.mxu1 %v5619_v15  ;;  %v5611_v13 = vld [vmem:[#allocation8 + $0x1f0] ss:$8 sps:$4 sm:$0xff]  }
 0x155   :  { %2248 = vmatpush1.bf16.msra.mxu0 %v5521_v46  ;;  %v5574_v46 = vld [vmem:[#allocation8 + $0x124] ss:$8 sps:$4 sm:$0xff]  }
 0x156   :  { %2249 = vmatprep.subr.bf16.mxu0 %v5526_v47  ;;  %2552 = vmatpush1.bf16.msra.mxu1 %v5617_v16  ;;  %v5572_v47 = vld [vmem:[#allocation8 + $0x120] ss:$8 sps:$4 sm:$0xff]   ;;  %v5622_v16 = vld [vmem:[#allocation10 + $0x44] ss:$16 sps:$4 sm:$0xff]  }
 0x157   :  { %2553 = vmatprep.subr.bf16.mxu1 %v5622_v16 }
 0x159   :  { %2250 = vmatpush1.bf16.msra.mxu0 %v5524_v48  ;;  %v5577_v48 = vld [vmem:[#allocation8 + $0x134] ss:$8 sps:$4 sm:$0xff]  }
 0x15a   :  { %2251 = vmatprep.subr.bf16.mxu0 %v5529_v49  ;;  %v5575_v49 = vld [vmem:[#allocation8 + $0x130] ss:$8 sps:$4 sm:$0xff]   ;;  %2554 = vmatpush1.bf16.msra.mxu1 %v5620_v17  ;;  %v5643_v17 = vld [vmem:[#allocation10 + $0x2c] ss:$16 sps:$4 sm:$0xff]  }
 0x15d   :  { %2252 = vmatpush1.bf16.msra.mxu0 %v5527_v50  ;;  %v5580_v50 = vld [vmem:[#allocation8 + $0x144] ss:$8 sps:$4 sm:$0xff]  }
 0x15e   :  { %2253 = vmatprep.subr.bf16.mxu0 %v5532_v51  ;;  %v5578_v51 = vld [vmem:[#allocation8 + $0x140] ss:$8 sps:$4 sm:$0xff]  }
 0x161   :  { %2254 = vmatpush1.bf16.msra.mxu0 %v5530_v52  ;;  %v5583_v52 = vld [vmem:[#allocation8 + $0x154] ss:$8 sps:$4 sm:$0xff]  }
 0x162   :  { %2255 = vmatprep.subr.bf16.mxu0 %v5535_v53  ;;  %v5581_v53 = vld [vmem:[#allocation8 + $0x150] ss:$8 sps:$4 sm:$0xff]  }
 0x165   :  { %2256 = vmatpush1.bf16.msra.mxu0 %v5533_v54  ;;  %v5586_v54 = vld [vmem:[#allocation8 + $0x164] ss:$8 sps:$4 sm:$0xff]  }
 0x166   :  { %2257 = vmatprep.subr.bf16.mxu0 %v5538_v55  ;;  %v5584_v55 = vld [vmem:[#allocation8 + $0x160] ss:$8 sps:$4 sm:$0xff]  }
 0x169   :  { %2258 = vmatpush1.bf16.msra.mxu0 %v5536_v56  ;;  %v5589_v56 = vld [vmem:[#allocation8 + $0x174] ss:$8 sps:$4 sm:$0xff]  }
 0x16a   :  { %2259 = vmatprep.subr.bf16.mxu0 %v5541_v57  ;;  %v5587_v57 = vld [vmem:[#allocation8 + $0x170] ss:$8 sps:$4 sm:$0xff]  }
 0x16d   :  { %2260 = vmatpush1.bf16.msra.mxu0 %v5539_v58  ;;  %v5592_v58 = vld [vmem:[#allocation8 + $0x184] ss:$8 sps:$4 sm:$0xff]  }
 0x16e   :  { %2261 = vmatprep.subr.bf16.mxu0 %v5544_v59  ;;  %v5590_v59 = vld [vmem:[#allocation8 + $0x180] ss:$8 sps:$4 sm:$0xff]  }
 0x171   :  { %2262 = vmatpush1.bf16.msra.mxu0 %v5542_v60  ;;  %v5595_v60 = vld [vmem:[#allocation8 + $0x194] ss:$8 sps:$4 sm:$0xff]  }
 0x172   :  { %2263 = vmatprep.subr.bf16.mxu0 %v5547_v61  ;;  %v5593_v61 = vld [vmem:[#allocation8 + $0x190] ss:$8 sps:$4 sm:$0xff]  }
 0x175   :  { %2264 = vmatpush1.bf16.msra.mxu0 %v5545_v62  ;;  %v5598_v62 = vld [vmem:[#allocation8 + $0x1a4] ss:$8 sps:$4 sm:$0xff]  }
 0x176   :  { %2265 = vmatprep.subr.bf16.mxu0 %v5550_v63  ;;  %v5596_v63 = vld [vmem:[#allocation8 + $0x1a0] ss:$8 sps:$4 sm:$0xff]  }
 0x179   :  { %2266 = vmatpush1.bf16.msra.mxu0 %v5548_v0  ;;  %v5601_v0 = vld [vmem:[#allocation8 + $0x1b4] ss:$8 sps:$4 sm:$0xff]  }
 0x17a   :  { %2267 = vmatprep.subr.bf16.mxu0 %v5553_v1  ;;  %v5599_v1 = vld [vmem:[#allocation8 + $0x1b0] ss:$8 sps:$4 sm:$0xff]  }
 0x17d   :  { %2268 = vmatpush1.bf16.msra.mxu0 %v5551_v2  ;;  %v5604_v2 = vld [vmem:[#allocation8 + $0x1c4] ss:$8 sps:$4 sm:$0xff]  }
 0x17e   :  { %2269 = vmatprep.subr.bf16.mxu0 %v5556_v3  ;;  %v5602_v3 = vld [vmem:[#allocation8 + $0x1c0] ss:$8 sps:$4 sm:$0xff]  }
 0x181   :  { %2270 = vmatpush1.bf16.msra.mxu0 %v5554_v4  ;;  %v6394_v4 = vsub.s32 2, %v6369_v18 }
 0x182   :  { %2271 = vmatprep.subr.bf16.mxu0 %v5559_v5  ;;  %v5607_v5 = vld [vmem:[#allocation8 + $0x1d4] ss:$8 sps:$4 sm:$0xff]  }
 0x185   :  { %2272 = vmatpush1.bf16.msra.mxu0 %v5557_v6  ;;  %v5605_v6 = vld [vmem:[#allocation8 + $0x1d0] ss:$8 sps:$4 sm:$0xff]  }
 0x186   :  { %2273 = vmatprep.subr.bf16.mxu0 %v5562_v7  ;;  %v359_v7 = vrot.slane %v6377_v20, %v6394_v4  ;;  %v5625_v20 = vld [vmem:[#allocation10 + $0x64] ss:$16 sps:$4 sm:$0xff]  }
 0x187   :  { %2555 = vmatprep.subr.bf16.mxu1 %v5625_v20  ;;  %v5641_v20 = vld [vmem:[#allocation10 + $0x28] ss:$16 sps:$4 sm:$0xff]  }
 0x189   :  { %2274 = vmatpush1.bf16.msra.mxu0 %v5560_v8  ;;  %v5610_v8 = vld [vmem:[#allocation8 + $0x1e4] ss:$8 sps:$4 sm:$0xff]  }
 0x18a   :  { %2275 = vmatprep.subr.bf16.mxu0 %v5565_v9  ;;  %v5608_v9 = vld [vmem:[#allocation8 + $0x1e0] ss:$8 sps:$4 sm:$0xff]  }
 0x18d   :  { %2276 = vmatpush1.bf16.msra.mxu0 %v5563_v10 }
 0x18e   :  { %2286 = vmatprep.subr.bf16.mxu0 %v5568_v12  ;;  %v5613_v12 = vld [vmem:[#allocation8 + $0x1f4] ss:$8 sps:$4 sm:$0xff]  }
 0x223   :  { %v1670_v26 = vpop.f32.mrb[0].mxu0  ;;  %v6391_v27 = vpop.f32.mrb[0].mxu1 }
 0x224   :  { %v5108_v28 = vadd.f32 %v1670_v26, %v351_v23  ;;  %v1672_v29 = vpop.f32.mrb[1].mxu0  ;;  %v1836_v30 = vpop.f32.mrb[1].mxu1  ;;  %v5110_v10 = vadd.f32 %v6391_v27, %v359_v7  ;;  %v5623_v23 = vld [vmem:[#allocation10 + $0x60] ss:$16 sps:$4 sm:$0xff]   ;;  %v5631_v26 = vld [vmem:[#allocation10 + $0xa4] ss:$16 sps:$4 sm:$0xff]  }
 0x225   :  { %v5109_v31 = vadd.f32 %v1672_v29, %v355_v24  ;;  %v5111_v32 = vadd.f32 %v1836_v30, %v363_v25  ;;  %v1674_v33 = vpop.f32.mrb[2].mxu0  ;;  %v1838_v34 = vpop.f32.mrb[2].mxu1  ;;  %2556 = vmatpush1.bf16.msra.mxu1 %v5623_v23  ;;  %v5628_v24 = vld [vmem:[#allocation10 + $0x84] ss:$16 sps:$4 sm:$0xff]   ;;  %v5626_v25 = vld [vmem:[#allocation10 + $0x80] ss:$16 sps:$4 sm:$0xff]  }
 0x226   :  { %v1841_v35 = vmax.f32 %v5108_v28, 0.0  ;;  %v1675_v36 = vpop.f32.mrb[3].mxu0  ;;  %v1839_v37 = vpop.f32.mrb[3].mxu1  ;;  %v1843_v14 = vmax.f32 %v5110_v10, 0.0  ;;  %2557 = vmatprep.subr.bf16.mxu1 %v5628_v24  ;;  %v5629_v27 = vld [vmem:[#allocation10 + $0xa0] ss:$16 sps:$4 sm:$0xff]  }
 0x227   :  { %v1842_v38 = vmax.f32 %v5109_v31, 0.0  ;;  %v1844_v39 = vmax.f32 %v5111_v32, 0.0  ;;  %v5634_v28 = vld [vmem:[#allocation10 + $0xc4] ss:$16 sps:$4 sm:$0xff]   ;;  %v5632_v29 = vld [vmem:[#allocation10 + $0xc0] ss:$16 sps:$4 sm:$0xff]  }
 0x228   :  { %v1845_v42 = vpack.c.bf16 %v1841_v35, %v1841_v35  ;;  %v1847_v15 = vpack.c.bf16 %v1843_v14, %v1843_v14  ;;  %v5637_v30 = vld [vmem:[#allocation10 + $0xe4] ss:$16 sps:$4 sm:$0xff]   ;;  %v5635_v31 = vld [vmem:[#allocation10 + $0xe0] ss:$16 sps:$4 sm:$0xff]   ;;  %v5640_v32 = vld [vmem:[#allocation10 + $0xc] ss:$16 sps:$4 sm:$0xff]  }
 0x229   :  { %v1846_v40 = vpack.c.bf16 %v1842_v38, %v1842_v38  ;;  %v1848_v44 = vpack.c.bf16 %v1844_v39, %v1844_v39  ;;  %2558 = vmatpush1.bf16.msra.mxu1 %v5626_v25  ;;  %v5665_v33 = vld [vmem:[#allocation11 + $0x8] ss:$28 sps:$4 sm:$0xff]   ;;  %v5671_v36 = vld [vmem:[#allocation11 + $0x40] ss:$28 sps:$4 sm:$0xff]   ;;  %v5677_v38 = vld [vmem:[#allocation11 + $0x78] ss:$28 sps:$4 sm:$0xff]  }
 0x22a   :  { %2559 = vmatprep.subr.bf16.mxu1 %v5631_v26  ;;  %v5667_v34 = vld [vmem:[#allocation11 + $0xc] ss:$28 sps:$4 sm:$0xff]   ;;  %v5673_v35 = vld [vmem:[#allocation11 + $0x44] ss:$28 sps:$4 sm:$0xff]   ;;  %v5679_v37 = vld [vmem:[#allocation11 + $0x7c] ss:$28 sps:$4 sm:$0xff]  }
 0x22b   :  { %2277 = vmatprep.mubr.bf16.mxu0 %v1846_v40  ;;  %v5685_v39 = vld [vmem:[#allocation11 + $0xb4] ss:$28 sps:$4 sm:$0xff]   ;;  %v5646_v23 = vld [vmem:[#allocation10 + $0x4c] ss:$16 sps:$4 sm:$0xff]   ;;  %v5644_v24 = vld [vmem:[#allocation10 + $0x48] ss:$16 sps:$4 sm:$0xff]  }
 0x22c   :  { %2278 = vmatmul.mubr.bf16.vlgmr.msra.gmra.mrb[4].mxu0 %v1845_v42  ;;  %v5683_v40 = vld [vmem:[#allocation11 + $0xb0] ss:$28 sps:$4 sm:$0xff]   ;;  %v5689_v42 = vld [vmem:[#allocation11 + $0xe8] ss:$28 sps:$4 sm:$0xff]  }
 0x22d   :  { %2287 = vmatpush1.bf16.msra.mxu0 %v5566_v41  ;;  %2318 = vmatprep.mubr.bf16.mxu0 %v1848_v44  ;;  %v5691_v41 = vld [vmem:[#allocation11 + $0xec] ss:$28 sps:$4 sm:$0xff]   ;;  %v5695_v44 = vld [vmem:[#allocation11 + $0x120] ss:$28 sps:$4 sm:$0xff]  }
 0x22e   :  { %2288 = vmatprep.subr.bf16.mxu0 %v5571_v43  ;;  %2560 = vmatpush1.bf16.msra.mxu1 %v5629_v27  ;;  %v5697_v43 = vld [vmem:[#allocation11 + $0x124] ss:$28 sps:$4 sm:$0xff]   ;;  %v5649_v25 = vld [vmem:[#allocation10 + $0x6c] ss:$16 sps:$4 sm:$0xff]   ;;  %v5647_v26 = vld [vmem:[#allocation10 + $0x68] ss:$16 sps:$4 sm:$0xff]  }
 0x22f   :  { %2561 = vmatprep.subr.bf16.mxu1 %v5634_v28  ;;  %v5652_v27 = vld [vmem:[#allocation10 + $0x8c] ss:$16 sps:$4 sm:$0xff]   ;;  %v5650_v28 = vld [vmem:[#allocation10 + $0x88] ss:$16 sps:$4 sm:$0xff]  }
 0x231   :  { %2289 = vmatpush1.bf16.msra.mxu0 %v5569_v45  ;;  %v5703_v45 = vld [vmem:[#allocation11 + $0x15c] ss:$28 sps:$4 sm:$0xff]  }
 0x232   :  { %2290 = vmatprep.subr.bf16.mxu0 %v5574_v46  ;;  %2562 = vmatpush1.bf16.msra.mxu1 %v5632_v29  ;;  %v5701_v46 = vld [vmem:[#allocation11 + $0x158] ss:$28 sps:$4 sm:$0xff]   ;;  %v5655_v29 = vld [vmem:[#allocation10 + $0xac] ss:$16 sps:$4 sm:$0xff]  }
 0x233   :  { %2563 = vmatprep.subr.bf16.mxu1 %v5637_v30  ;;  %v5653_v30 = vld [vmem:[#allocation10 + $0xa8] ss:$16 sps:$4 sm:$0xff]  }
 0x235   :  { %2291 = vmatpush1.bf16.msra.mxu0 %v5572_v47  ;;  %v5709_v47 = vld [vmem:[#allocation11 + $0x194] ss:$28 sps:$4 sm:$0xff]  }
 0x236   :  { %2292 = vmatprep.subr.bf16.mxu0 %v5577_v48  ;;  %2564 = vmatpush1.bf16.msra.mxu1 %v5635_v31  ;;  %v5707_v48 = vld [vmem:[#allocation11 + $0x190] ss:$28 sps:$4 sm:$0xff]  }
 0x237   :  { %2590 = vmatprep.subr.bf16.mxu1 %v5640_v32  ;;  %v5658_v31 = vld [vmem:[#allocation10 + $0xcc] ss:$16 sps:$4 sm:$0xff]  }
 0x238   :  { %v5661_v32 = vld [vmem:[#allocation10 + $0xec] ss:$16 sps:$4 sm:$0xff]  }
 0x239   :  { %2293 = vmatpush1.bf16.msra.mxu0 %v5575_v49  ;;  %v5715_v49 = vld [vmem:[#allocation11 + $0x1cc] ss:$28 sps:$4 sm:$0xff]  }
 0x23a   :  { %2294 = vmatprep.subr.bf16.mxu0 %v5580_v50  ;;  %v5713_v50 = vld [vmem:[#allocation11 + $0x1c8] ss:$28 sps:$4 sm:$0xff]  }
 0x23d   :  { %2295 = vmatpush1.bf16.msra.mxu0 %v5578_v51  ;;  %v5721_v51 = vld [vmem:[#allocation11 + $0x204] ss:$28 sps:$4 sm:$0xff]  }
 0x23e   :  { %2296 = vmatprep.subr.bf16.mxu0 %v5583_v52  ;;  %v5719_v52 = vld [vmem:[#allocation11 + $0x200] ss:$28 sps:$4 sm:$0xff]  }
 0x241   :  { %2297 = vmatpush1.bf16.msra.mxu0 %v5581_v53  ;;  %v5727_v53 = vld [vmem:[#allocation11 + $0x23c] ss:$28 sps:$4 sm:$0xff]  }
 0x242   :  { %2298 = vmatprep.subr.bf16.mxu0 %v5586_v54  ;;  %v5725_v54 = vld [vmem:[#allocation11 + $0x238] ss:$28 sps:$4 sm:$0xff]  }
 0x245   :  { %2299 = vmatpush1.bf16.msra.mxu0 %v5584_v55  ;;  %v5733_v55 = vld [vmem:[#allocation11 + $0x274] ss:$28 sps:$4 sm:$0xff]  }
 0x246   :  { %2300 = vmatprep.subr.bf16.mxu0 %v5589_v56  ;;  %v5731_v56 = vld [vmem:[#allocation11 + $0x270] ss:$28 sps:$4 sm:$0xff]  }
 0x249   :  { %2301 = vmatpush1.bf16.msra.mxu0 %v5587_v57  ;;  %v5739_v57 = vld [vmem:[#allocation11 + $0x2ac] ss:$28 sps:$4 sm:$0xff]  }
 0x24a   :  { %2302 = vmatprep.subr.bf16.mxu0 %v5592_v58  ;;  %v5737_v58 = vld [vmem:[#allocation11 + $0x2a8] ss:$28 sps:$4 sm:$0xff]  }
 0x24d   :  { %2303 = vmatpush1.bf16.msra.mxu0 %v5590_v59  ;;  %v5745_v59 = vld [vmem:[#allocation11 + $0x2e4] ss:$28 sps:$4 sm:$0xff]  }
 0x24e   :  { %2304 = vmatprep.subr.bf16.mxu0 %v5595_v60  ;;  %v5743_v60 = vld [vmem:[#allocation11 + $0x2e0] ss:$28 sps:$4 sm:$0xff]  }
 0x251   :  { %2305 = vmatpush1.bf16.msra.mxu0 %v5593_v61  ;;  %v1913_v61 = vld [vmem:[%s6493_s5] sm:$0x3] }
 0x252   :  { %2306 = vmatprep.subr.bf16.mxu0 %v5598_v62  ;;  %v1918_v62 = vrot.slane %v1913_v61, %v6372_v19 }
 0x255   :  { %2307 = vmatpush1.bf16.msra.mxu0 %v5596_v63  ;;  %v1922_v63 = vrot.slane %v1913_v61, %v6380_v21  ;;  %v5740_v61 = vld [vmem:[#allocation11 + $0x2d8] ss:$28 sps:$4 sm:$0xff]  }
 0x256   :  { %2308 = vmatprep.subr.bf16.mxu0 %v5601_v0 }
 0x259   :  { %2309 = vmatpush1.bf16.msra.mxu0 %v5599_v1 }
 0x25a   :  { %2310 = vmatprep.subr.bf16.mxu0 %v5604_v2 }
 0x25d   :  { %2311 = vmatpush1.bf16.msra.mxu0 %v5602_v3 }
 0x25e   :  { %2312 = vmatprep.subr.bf16.mxu0 %v5607_v5 }
 0x261   :  { %2313 = vmatpush1.bf16.msra.mxu0 %v5605_v6 }
 0x262   :  { %2314 = vmatprep.subr.bf16.mxu0 %v5610_v8 }
 0x265   :  { %2315 = vmatpush1.bf16.msra.mxu0 %v5608_v9  ;;  %v2327_v9 = vld [vmem:[#allocation5] sm:$0xf] }
 0x266   :  { %2316 = vmatprep.subr.bf16.mxu0 %v5613_v12  ;;  %v2328_v10 = vunpack.c.l.bf16 %v2327_v9  ;;  %v6408_v9 = vld [vmem:[%s6495_s7] sm:$0xf] }
 0x269   :  { %2317 = vmatpush1.bf16.msra.mxu0 %v5611_v13 }
 0x26a   :  { %4166 = vmatprep.subr.bf16.mxu0 %v5667_v34  ;;  %v5664_v34 = vld [vmem:[#allocation11 + $0x4] ss:$28 sps:$4 sm:$0xff]  }
 0x26c   :  { %2319 = vmatmul.mubr.bf16.vlgmr.msra.gmra.mrb[4].mxu0 %v1847_v15  ;;  %v5638_v15 = vld [vmem:[#allocation10 + $0x8] ss:$16 sps:$4 sm:$0xff]  }
 0x26d   :  { %4167 = vmatpush1.bf16.msra.mxu0 %v5665_v33  ;;  %v5659_v33 = vld [vmem:[#allocation10 + $0xe8] ss:$16 sps:$4 sm:$0xff]  }
 0x26e   :  { %4168 = vmatprep.subr.bf16.mxu0 %v5673_v35  ;;  %v5662_v35 = vld [vmem:[#allocation11] ss:$28 sps:$4 sm:$0xff]  }
 0x271   :  { %4169 = vmatpush1.bf16.msra.mxu0 %v5671_v36  ;;  %v5670_v36 = vld [vmem:[#allocation11 + $0x3c] ss:$28 sps:$4 sm:$0xff]  }
 0x272   :  { %4170 = vmatprep.subr.bf16.mxu0 %v5679_v37  ;;  %v5668_v37 = vld [vmem:[#allocation11 + $0x38] ss:$28 sps:$4 sm:$0xff]  }
 0x275   :  { %4171 = vmatpush1.bf16.msra.mxu0 %v5677_v38  ;;  %v5676_v38 = vld [vmem:[#allocation11 + $0x74] ss:$28 sps:$4 sm:$0xff]  }
 0x276   :  { %4172 = vmatprep.subr.bf16.mxu0 %v5685_v39  ;;  %v5674_v39 = vld [vmem:[#allocation11 + $0x70] ss:$28 sps:$4 sm:$0xff]  }
 0x279   :  { %4173 = vmatpush1.bf16.msra.mxu0 %v5683_v40  ;;  %v5682_v40 = vld [vmem:[#allocation11 + $0xac] ss:$28 sps:$4 sm:$0xff]  }
 0x27a   :  { %4174 = vmatprep.subr.bf16.mxu0 %v5691_v41  ;;  %v5680_v41 = vld [vmem:[#allocation11 + $0xa8] ss:$28 sps:$4 sm:$0xff]  }
 0x27d   :  { %4175 = vmatpush1.bf16.msra.mxu0 %v5689_v42  ;;  %v5688_v42 = vld [vmem:[#allocation11 + $0xe4] ss:$28 sps:$4 sm:$0xff]  }
 0x27e   :  { %4176 = vmatprep.subr.bf16.mxu0 %v5697_v43  ;;  %v5686_v43 = vld [vmem:[#allocation11 + $0xe0] ss:$28 sps:$4 sm:$0xff]  }
 0x281   :  { %4177 = vmatpush1.bf16.msra.mxu0 %v5695_v44  ;;  %v5694_v44 = vld [vmem:[#allocation11 + $0x11c] ss:$28 sps:$4 sm:$0xff]  }
 0x282   :  { %4178 = vmatprep.subr.bf16.mxu0 %v5703_v45  ;;  %v5692_v45 = vld [vmem:[#allocation11 + $0x118] ss:$28 sps:$4 sm:$0xff]  }
 0x285   :  { %4179 = vmatpush1.bf16.msra.mxu0 %v5701_v46  ;;  %v5700_v46 = vld [vmem:[#allocation11 + $0x154] ss:$28 sps:$4 sm:$0xff]  }
 0x286   :  { %4180 = vmatprep.subr.bf16.mxu0 %v5709_v47  ;;  %v5698_v47 = vld [vmem:[#allocation11 + $0x150] ss:$28 sps:$4 sm:$0xff]  }
 0x289   :  { %4181 = vmatpush1.bf16.msra.mxu0 %v5707_v48  ;;  %v5706_v48 = vld [vmem:[#allocation11 + $0x18c] ss:$28 sps:$4 sm:$0xff]  }
 0x28a   :  { %4182 = vmatprep.subr.bf16.mxu0 %v5715_v49  ;;  %v5704_v49 = vld [vmem:[#allocation11 + $0x188] ss:$28 sps:$4 sm:$0xff]  }
 0x28d   :  { %4183 = vmatpush1.bf16.msra.mxu0 %v5713_v50  ;;  %v5712_v50 = vld [vmem:[#allocation11 + $0x1c4] ss:$28 sps:$4 sm:$0xff]  }
 0x28e   :  { %4184 = vmatprep.subr.bf16.mxu0 %v5721_v51  ;;  %v5710_v51 = vld [vmem:[#allocation11 + $0x1c0] ss:$28 sps:$4 sm:$0xff]  }
 0x291   :  { %4185 = vmatpush1.bf16.msra.mxu0 %v5719_v52  ;;  %v5718_v52 = vld [vmem:[#allocation11 + $0x1fc] ss:$28 sps:$4 sm:$0xff]  }
 0x292   :  { %4186 = vmatprep.subr.bf16.mxu0 %v5727_v53  ;;  %v5716_v53 = vld [vmem:[#allocation11 + $0x1f8] ss:$28 sps:$4 sm:$0xff]  }
 0x295   :  { %4187 = vmatpush1.bf16.msra.mxu0 %v5725_v54  ;;  %v5724_v54 = vld [vmem:[#allocation11 + $0x234] ss:$28 sps:$4 sm:$0xff]  }
 0x296   :  { %4188 = vmatprep.subr.bf16.mxu0 %v5733_v55  ;;  %v5722_v55 = vld [vmem:[#allocation11 + $0x230] ss:$28 sps:$4 sm:$0xff]  }
 0x299   :  { %4189 = vmatpush1.bf16.msra.mxu0 %v5731_v56  ;;  %v5730_v56 = vld [vmem:[#allocation11 + $0x26c] ss:$28 sps:$4 sm:$0xff]  }
 0x29a   :  { %4190 = vmatprep.subr.bf16.mxu0 %v5739_v57  ;;  %v5728_v57 = vld [vmem:[#allocation11 + $0x268] ss:$28 sps:$4 sm:$0xff]  }
 0x29d   :  { %4191 = vmatpush1.bf16.msra.mxu0 %v5737_v58  ;;  %v5736_v58 = vld [vmem:[#allocation11 + $0x2a4] ss:$28 sps:$4 sm:$0xff]  }
 0x29e   :  { %4192 = vmatprep.subr.bf16.mxu0 %v5745_v59  ;;  %v5734_v59 = vld [vmem:[#allocation11 + $0x2a0] ss:$28 sps:$4 sm:$0xff]  }
 0x2a1   :  { %4193 = vmatpush1.bf16.msra.mxu0 %v5743_v60  ;;  %v5742_v60 = vld [vmem:[#allocation11 + $0x2dc] ss:$28 sps:$4 sm:$0xff]  }
 0x33f   :  { %v2320_v0 = vpop.f32.mrb[4].mxu0 }
 0x340   :  { %v5112_v1 = vadd.f32 %v2320_v0, %v1918_v62  ;;  %v2322_v2 = vpop.f32.mrb[5].mxu0  ;;  %v5748_v62 = vld [vmem:[#allocation11 + $0x314] ss:$28 sps:$4 sm:$0xff]  }
 0x341   :  { %v5113_v3 = vadd.f32 %v2322_v2, %v1922_v63  ;;  %v2324_v5 = vpop.f32.mrb[6].mxu0  ;;  %v5751_v63 = vld [vmem:[#allocation11 + $0x31c] ss:$28 sps:$4 sm:$0xff]   ;;  %v5754_v2 = vld [vmem:[#allocation11 + $0x34c] ss:$28 sps:$4 sm:$0xff]  }
 0x342   :  { %4471 = vst [vmem:[#allocation14] sm:$0xff] %v5112_v1  ;;  %v2325_v6 = vpop.f32.mrb[7].mxu0  ;;  %v5749_v0 = vld [vmem:[#allocation11 + $0x318] ss:$28 sps:$4 sm:$0xff]   ;;  %4194 = vmatprep.subr.bf16.mxu0 %v5751_v63  ;;  %v5755_v5 = vld [vmem:[#allocation11 + $0x350] ss:$28 sps:$4 sm:$0xff]  }
 0x343   :  { %v2329_v7 = vmul.f32 0.5, %v5113_v3  ;;  %4472 = vst [vmem:[#allocation14 + $0x8] sm:$0xff] %v5113_v3  ;;  %4195 = vmatpush1.bf16.msra.mxu0 %v5749_v0  ;;  %v5757_v3 = vld [vmem:[#allocation11 + $0x354] ss:$28 sps:$4 sm:$0xff]   ;;  %v5752_v6 = vld [vmem:[#allocation11 + $0x348] ss:$28 sps:$4 sm:$0xff]  }
 0x344   :  { %4196 = vmatprep.subr.bf16.mxu0 %v5757_v3  ;;  %v5811_v63 = vld [vmem:[#allocation11 + $0x54c] ss:$28 sps:$4 sm:$0xff]  }
 0x345   :  { %v2330_v8 = vmul.f32 1.442695, %v2329_v7  ;;  %v5760_v7 = vld [vmem:[#allocation11 + $0x384] ss:$28 sps:$4 sm:$0xff]  }
 0x346   :  { %v5809_v3 = vld [vmem:[#allocation11 + $0x548] ss:$28 sps:$4 sm:$0xff]  }
 0x347   :  { %5982 = vpow2.f32 %v2330_v8  ;;  %4197 = vmatpush1.bf16.msra.mxu0 %v5755_v5  ;;  %v5763_v8 = vld [vmem:[#allocation11 + $0x38c] ss:$28 sps:$4 sm:$0xff]   ;;  %v5814_v5 = vld [vmem:[#allocation11 + $0x57c] ss:$28 sps:$4 sm:$0xff]  }
 0x348   :  { %4207 = vmatprep.subr.bf16.mxu0 %v5763_v8  ;;  %v5815_v8 = vld [vmem:[#allocation11 + $0x580] ss:$28 sps:$4 sm:$0xff]  }
 0x351   :  { %v5983_v12 = vpop.eup %5982 }
 0x352   :  { %v2332_v13 = vmul.f32 %v5983_v12, %v2328_v10  ;;  %v2372_v10 = vrot.slane %v6408_v9, %v6372_v19  ;;  %v2376_v12 = vrot.slane %v6408_v9, %v6380_v21 }
 0x354   :  { %v2333_v14 = vadd.f32 %v5112_v1, %v2332_v13  ;;  %v5746_v1 = vld [vmem:[#allocation11 + $0x310] ss:$28 sps:$4 sm:$0xff]  }
 0x356   :  { %v2334_v16 = vpack.c.bf16 %v2333_v14, %v2333_v14 }
 0x358   :  { %2582 = vmatmul.mubr.bf16.vlgmr.msra.gmra.mrb[4].mxu1 %v2334_v16 }
 0x359   :  { %2591 = vmatpush1.bf16.msra.mxu1 %v5638_v15  ;;  %2622 = vmatprep.mubr.bf16.mxu1 %v6198_v22  ;;  %v5656_v22 = vld [vmem:[#allocation10 + $0xc8] ss:$16 sps:$4 sm:$0xff]  }
 0x35a   :  { %2592 = vmatprep.subr.bf16.mxu1 %v5643_v17 }
 0x35d   :  { %2593 = vmatpush1.bf16.msra.mxu1 %v5641_v20 }
 0x35e   :  { %2594 = vmatprep.subr.bf16.mxu1 %v5646_v23 }
 0x361   :  { %2595 = vmatpush1.bf16.msra.mxu1 %v5644_v24 }
 0x362   :  { %2596 = vmatprep.subr.bf16.mxu1 %v5649_v25 }
 0x365   :  { %2597 = vmatpush1.bf16.msra.mxu1 %v5647_v26  ;;  %v5758_v26 = vld [vmem:[#allocation11 + $0x380] ss:$28 sps:$4 sm:$0xff]  }
 0x366   :  { %2598 = vmatprep.subr.bf16.mxu1 %v5652_v27  ;;  %v5761_v27 = vld [vmem:[#allocation11 + $0x388] ss:$28 sps:$4 sm:$0xff]  }
 0x369   :  { %2599 = vmatpush1.bf16.msra.mxu1 %v5650_v28 }
 0x36a   :  { %2600 = vmatprep.subr.bf16.mxu1 %v5655_v29  ;;  %v5766_v29 = vld [vmem:[#allocation11 + $0x3bc] ss:$28 sps:$4 sm:$0xff]  }
 0x36d   :  { %2601 = vmatpush1.bf16.msra.mxu1 %v5653_v30  ;;  %v5769_v30 = vld [vmem:[#allocation11 + $0x3c4] ss:$28 sps:$4 sm:$0xff]  }
 0x36e   :  { %2602 = vmatprep.subr.bf16.mxu1 %v5658_v31  ;;  %v5764_v31 = vld [vmem:[#allocation11 + $0x3b8] ss:$28 sps:$4 sm:$0xff]  }
 0x371   :  { %2603 = vmatpush1.bf16.msra.mxu1 %v5656_v22  ;;  %v5767_v22 = vld [vmem:[#allocation11 + $0x3c0] ss:$28 sps:$4 sm:$0xff]  }
 0x372   :  { %2604 = vmatprep.subr.bf16.mxu1 %v5661_v32  ;;  %v5772_v32 = vld [vmem:[#allocation11 + $0x3f4] ss:$28 sps:$4 sm:$0xff]  }
 0x375   :  { %2605 = vmatpush1.bf16.msra.mxu1 %v5659_v33  ;;  %v5775_v33 = vld [vmem:[#allocation11 + $0x3fc] ss:$28 sps:$4 sm:$0xff]  }
 0x376   :  { %4084 = vmatprep.subr.bf16.mxu1 %v5664_v34  ;;  %v5770_v34 = vld [vmem:[#allocation11 + $0x3f0] ss:$28 sps:$4 sm:$0xff]  }
 0x378   :  { %2623 = vmatmul.mubr.bf16.vlgmr.msra.gmra.mrb[8].mxu1 %v2334_v16 }
 0x379   :  { %4085 = vmatpush1.bf16.msra.mxu1 %v5662_v35  ;;  %v5773_v35 = vld [vmem:[#allocation11 + $0x3f8] ss:$28 sps:$4 sm:$0xff]  }
 0x37a   :  { %4086 = vmatprep.subr.bf16.mxu1 %v5670_v36  ;;  %v5778_v36 = vld [vmem:[#allocation11 + $0x42c] ss:$28 sps:$4 sm:$0xff]  }
 0x37d   :  { %4087 = vmatpush1.bf16.msra.mxu1 %v5668_v37  ;;  %v5781_v37 = vld [vmem:[#allocation11 + $0x434] ss:$28 sps:$4 sm:$0xff]  }
 0x37e   :  { %4088 = vmatprep.subr.bf16.mxu1 %v5676_v38  ;;  %v5776_v38 = vld [vmem:[#allocation11 + $0x428] ss:$28 sps:$4 sm:$0xff]  }
 0x381   :  { %4089 = vmatpush1.bf16.msra.mxu1 %v5674_v39  ;;  %v5779_v39 = vld [vmem:[#allocation11 + $0x430] ss:$28 sps:$4 sm:$0xff]  }
 0x382   :  { %4090 = vmatprep.subr.bf16.mxu1 %v5682_v40  ;;  %v5784_v40 = vld [vmem:[#allocation11 + $0x464] ss:$28 sps:$4 sm:$0xff]  }
 0x385   :  { %4091 = vmatpush1.bf16.msra.mxu1 %v5680_v41  ;;  %v5787_v41 = vld [vmem:[#allocation11 + $0x46c] ss:$28 sps:$4 sm:$0xff]  }
 0x386   :  { %4092 = vmatprep.subr.bf16.mxu1 %v5688_v42  ;;  %v5782_v42 = vld [vmem:[#allocation11 + $0x460] ss:$28 sps:$4 sm:$0xff]  }
 0x389   :  { %4093 = vmatpush1.bf16.msra.mxu1 %v5686_v43  ;;  %v5785_v43 = vld [vmem:[#allocation11 + $0x468] ss:$28 sps:$4 sm:$0xff]  }
 0x38a   :  { %4094 = vmatprep.subr.bf16.mxu1 %v5694_v44  ;;  %v5790_v44 = vld [vmem:[#allocation11 + $0x49c] ss:$28 sps:$4 sm:$0xff]  }
 0x38d   :  { %4095 = vmatpush1.bf16.msra.mxu1 %v5692_v45  ;;  %v5793_v45 = vld [vmem:[#allocation11 + $0x4a4] ss:$28 sps:$4 sm:$0xff]  }
 0x38e   :  { %4096 = vmatprep.subr.bf16.mxu1 %v5700_v46  ;;  %v5788_v46 = vld [vmem:[#allocation11 + $0x498] ss:$28 sps:$4 sm:$0xff]  }
 0x391   :  { %4097 = vmatpush1.bf16.msra.mxu1 %v5698_v47  ;;  %v5791_v47 = vld [vmem:[#allocation11 + $0x4a0] ss:$28 sps:$4 sm:$0xff]  }
 0x392   :  { %4098 = vmatprep.subr.bf16.mxu1 %v5706_v48  ;;  %v5796_v48 = vld [vmem:[#allocation11 + $0x4d4] ss:$28 sps:$4 sm:$0xff]  }
 0x395   :  { %4099 = vmatpush1.bf16.msra.mxu1 %v5704_v49  ;;  %v5799_v49 = vld [vmem:[#allocation11 + $0x4dc] ss:$28 sps:$4 sm:$0xff]  }
 0x396   :  { %4100 = vmatprep.subr.bf16.mxu1 %v5712_v50  ;;  %v2384_v50 = vrot.slane %v6408_v9, %v6383_v11 }
 0x399   :  { %4101 = vmatpush1.bf16.msra.mxu1 %v5710_v51  ;;  %v5794_v51 = vld [vmem:[#allocation11 + $0x4d0] ss:$28 sps:$4 sm:$0xff]  }
 0x39a   :  { %4102 = vmatprep.subr.bf16.mxu1 %v5718_v52  ;;  %v5797_v52 = vld [vmem:[#allocation11 + $0x4d8] ss:$28 sps:$4 sm:$0xff]  }
 0x39d   :  { %4103 = vmatpush1.bf16.msra.mxu1 %v5716_v53  ;;  %v5802_v53 = vld [vmem:[#allocation11 + $0x50c] ss:$28 sps:$4 sm:$0xff]  }
 0x39e   :  { %4104 = vmatprep.subr.bf16.mxu1 %v5724_v54  ;;  %v5805_v54 = vld [vmem:[#allocation11 + $0x514] ss:$28 sps:$4 sm:$0xff]  }
 0x3a1   :  { %4105 = vmatpush1.bf16.msra.mxu1 %v5722_v55 }
 0x3a2   :  { %4106 = vmatprep.subr.bf16.mxu1 %v5730_v56 }
 0x3a5   :  { %4107 = vmatpush1.bf16.msra.mxu1 %v5728_v57 }
 0x3a6   :  { %4108 = vmatprep.subr.bf16.mxu1 %v5736_v58 }
 0x3a9   :  { %4109 = vmatpush1.bf16.msra.mxu1 %v5734_v59  ;;  %v5800_v59 = vld [vmem:[#allocation11 + $0x508] ss:$28 sps:$4 sm:$0xff]  }
 0x3aa   :  { %4110 = vmatprep.subr.bf16.mxu1 %v5742_v60  ;;  %v5803_v60 = vld [vmem:[#allocation11 + $0x510] ss:$28 sps:$4 sm:$0xff]  }
 0x3ad   :  { %4111 = vmatpush1.bf16.msra.mxu1 %v5740_v61 }
 0x3ae   :  { %4112 = vmatprep.subr.bf16.mxu1 %v5748_v62  ;;  %v5808_v62 = vld [vmem:[#allocation11 + $0x544] ss:$28 sps:$4 sm:$0xff]  }
 0x3b1   :  { %4113 = vmatpush1.bf16.msra.mxu1 %v5746_v1 }
 0x3b2   :  { %4114 = vmatprep.subr.bf16.mxu1 %v5754_v2  ;;  %v5806_v2 = vld [vmem:[#allocation11 + $0x540] ss:$28 sps:$4 sm:$0xff]  }
 0x3b5   :  { %4115 = vmatpush1.bf16.msra.mxu1 %v5752_v6  ;;  %v5817_v6 = vld [vmem:[#allocation11 + $0x584] ss:$28 sps:$4 sm:$0xff]  }
 0x3b6   :  { %4125 = vmatprep.subr.bf16.mxu1 %v5760_v7  ;;  %v5812_v7 = vld [vmem:[#allocation11 + $0x578] ss:$28 sps:$4 sm:$0xff]  }
 0x42b   :  { %v2583_v13 = vpop.f32.mrb[4].mxu1 }
 0x42c   :  { %v2584_v14 = vadd.f32 %v2583_v13, %v2372_v10  ;;  %v2585_v15 = vpop.f32.mrb[5].mxu1  ;;  %v5820_v10 = vld [vmem:[#allocation11 + $0x5b4] ss:$28 sps:$4 sm:$0xff]  }
 0x42d   :  { %v2586_v16 = vadd.f32 %v2585_v15, %v2376_v12  ;;  %v2587_v17 = vpop.f32.mrb[6].mxu1  ;;  %v5823_v12 = vld [vmem:[#allocation11 + $0x5bc] ss:$28 sps:$4 sm:$0xff]   ;;  %v5818_v13 = vld [vmem:[#allocation11 + $0x5b0] ss:$28 sps:$4 sm:$0xff]  }
 0x42e   :  { %v2631_v20 = vmax.f32 %v2584_v14, 0.0  ;;  %v2588_v23 = vpop.f32.mrb[7].mxu1  ;;  %v5821_v14 = vld [vmem:[#allocation11 + $0x5b8] ss:$28 sps:$4 sm:$0xff]   ;;  %v5826_v15 = vld [vmem:[#allocation11 + $0x5ec] ss:$28 sps:$4 sm:$0xff]  }
 0x42f   :  { %v2632_v24 = vmax.f32 %v2586_v16, 0.0  ;;  %v5829_v16 = vld [vmem:[#allocation11 + $0x5f4] ss:$28 sps:$4 sm:$0xff]   ;;  %v5824_v17 = vld [vmem:[#allocation11 + $0x5e8] ss:$28 sps:$4 sm:$0xff]  }
 0x430   :  { %v6416_v28 = vpack.c.bf16 %v2631_v20, %v2631_v20  ;;  %v5827_v20 = vld [vmem:[#allocation11 + $0x5f0] ss:$28 sps:$4 sm:$0xff]   ;;  %v5832_v23 = vld [vmem:[#allocation11 + $0x624] ss:$28 sps:$4 sm:$0xff]  }
 0x431   :  { %v6414_v25 = vpack.c.bf16 %v2632_v24, %v2632_v24  ;;  %v5835_v24 = vld [vmem:[#allocation11 + $0x62c] ss:$28 sps:$4 sm:$0xff]  }
 0x433   :  { %4116 = vmatprep.mubr.bf16.mxu1 %v6414_v25  ;;  %4198 = vmatprep.mubr.bf16.mxu0 %v6414_v25 }
 0x434   :  { %4117 = vmatmul.mubr.bf16.vlgmr.msra.gmra.mrb[12].mxu1 %v6416_v28  ;;  %4199 = vmatmul.mubr.bf16.vlgmr.msra.gmra.mrb[8].mxu0 %v6416_v28 }
 0x435   :  { %4126 = vmatpush1.bf16.msra.mxu1 %v5758_v26  ;;  %4208 = vmatpush1.bf16.msra.mxu0 %v5761_v27  ;;  %v5830_v26 = vld [vmem:[#allocation11 + $0x620] ss:$28 sps:$4 sm:$0xff]   ;;  %v5833_v27 = vld [vmem:[#allocation11 + $0x628] ss:$28 sps:$4 sm:$0xff]  }
 0x436   :  { %4127 = vmatprep.subr.bf16.mxu1 %v5766_v29  ;;  %4209 = vmatprep.subr.bf16.mxu0 %v5769_v30  ;;  %v5838_v29 = vld [vmem:[#allocation11 + $0x65c] ss:$28 sps:$4 sm:$0xff]   ;;  %v5841_v30 = vld [vmem:[#allocation11 + $0x664] ss:$28 sps:$4 sm:$0xff]  }
 0x439   :  { %4128 = vmatpush1.bf16.msra.mxu1 %v5764_v31  ;;  %4210 = vmatpush1.bf16.msra.mxu0 %v5767_v22  ;;  %v5836_v31 = vld [vmem:[#allocation11 + $0x658] ss:$28 sps:$4 sm:$0xff]   ;;  %v5839_v22 = vld [vmem:[#allocation11 + $0x660] ss:$28 sps:$4 sm:$0xff]  }
 0x43a   :  { %4129 = vmatprep.subr.bf16.mxu1 %v5772_v32  ;;  %4211 = vmatprep.subr.bf16.mxu0 %v5775_v33  ;;  %v2380_v32 = vrot.slane %v6408_v9, %v6394_v4  ;;  %v5844_v33 = vld [vmem:[#allocation11 + $0x694] ss:$28 sps:$4 sm:$0xff]  }
 0x43b   :  { %v5856_v9 = vld [vmem:[#allocation11 + $0x14] ss:$28 sps:$4 sm:$0xff]  }
 0x43d   :  { %4130 = vmatpush1.bf16.msra.mxu1 %v5770_v34  ;;  %4212 = vmatpush1.bf16.msra.mxu0 %v5773_v35  ;;  %v5847_v34 = vld [vmem:[#allocation11 + $0x69c] ss:$28 sps:$4 sm:$0xff]   ;;  %v5842_v35 = vld [vmem:[#allocation11 + $0x690] ss:$28 sps:$4 sm:$0xff]  }
 0x43e   :  { %4131 = vmatprep.subr.bf16.mxu1 %v5778_v36  ;;  %4213 = vmatprep.subr.bf16.mxu0 %v5781_v37  ;;  %v5845_v36 = vld [vmem:[#allocation11 + $0x698] ss:$28 sps:$4 sm:$0xff]  }
 0x441   :  { %4132 = vmatpush1.bf16.msra.mxu1 %v5776_v38  ;;  %4214 = vmatpush1.bf16.msra.mxu0 %v5779_v39  ;;  %v5850_v38 = vld [vmem:[#allocation11 + $0x6cc] ss:$28 sps:$4 sm:$0xff]   ;;  %v5853_v39 = vld [vmem:[#allocation11 + $0x6d4] ss:$28 sps:$4 sm:$0xff]  }
 0x442   :  { %4133 = vmatprep.subr.bf16.mxu1 %v5784_v40  ;;  %4215 = vmatprep.subr.bf16.mxu0 %v5787_v41  ;;  %v5848_v40 = vld [vmem:[#allocation11 + $0x6c8] ss:$28 sps:$4 sm:$0xff]   ;;  %v5851_v41 = vld [vmem:[#allocation11 + $0x6d0] ss:$28 sps:$4 sm:$0xff]  }
 0x445   :  { %4134 = vmatpush1.bf16.msra.mxu1 %v5782_v42  ;;  %4216 = vmatpush1.bf16.msra.mxu0 %v5785_v43  ;;  %v5857_v43 = vld [vmem:[#allocation11 + $0x1d8] ss:$28 sps:$4 sm:$0xff]  }
 0x446   :  { %4135 = vmatprep.subr.bf16.mxu1 %v5790_v44  ;;  %4217 = vmatprep.subr.bf16.mxu0 %v5793_v45  ;;  %v5854_v44 = vld [vmem:[#allocation11 + $0x10] ss:$28 sps:$4 sm:$0xff]  }
 0x449   :  { %4136 = vmatpush1.bf16.msra.mxu1 %v5788_v46  ;;  %4218 = vmatpush1.bf16.msra.mxu0 %v5791_v47  ;;  %v5858_v46 = vld [vmem:[#allocation11 + $0x18] ss:$28 sps:$4 sm:$0xff]   ;;  %v5861_v47 = vld [vmem:[#allocation11 + $0x4c] ss:$28 sps:$4 sm:$0xff]  }
 0x44a   :  { %4137 = vmatprep.subr.bf16.mxu1 %v5796_v48  ;;  %4219 = vmatprep.subr.bf16.mxu0 %v5799_v49  ;;  %v5862_v48 = vld [vmem:[#allocation11 + $0x210] ss:$28 sps:$4 sm:$0xff]   ;;  %v5859_v49 = vld [vmem:[#allocation11 + $0x48] ss:$28 sps:$4 sm:$0xff]  }
 0x44b   :  { %v6424_v55 = vpop.f32.mrb[8].mxu1 }
 0x44c   :  { %v2626_v56 = vpop.f32.mrb[9].mxu1  ;;  %v2625_v37 = vadd.f32 %v6424_v55, %v2380_v32  ;;  %v5871_v55 = vld [vmem:[#allocation11 + $0xbc] ss:$28 sps:$4 sm:$0xff]  }
 0x44d   :  { %v2627_v57 = vadd.f32 %v2626_v56, %v2384_v50  ;;  %v2628_v58 = vpop.f32.mrb[10].mxu1  ;;  %4138 = vmatpush1.bf16.msra.mxu1 %v5794_v51  ;;  %4220 = vmatpush1.bf16.msra.mxu0 %v5797_v52  ;;  %v5863_v50 = vld [vmem:[#allocation11 + $0x50] ss:$28 sps:$4 sm:$0xff]   ;;  %v5866_v51 = vld [vmem:[#allocation11 + $0x84] ss:$28 sps:$4 sm:$0xff]  }
 0x44e   :  { %v2629_v61 = vpop.f32.mrb[11].mxu1  ;;  %4139 = vmatprep.subr.bf16.mxu1 %v5802_v53  ;;  %4221 = vmatprep.subr.bf16.mxu0 %v5805_v54  ;;  %v2633_v42 = vmax.f32 %v2625_v37, 0.0  ;;  %v5867_v52 = vld [vmem:[#allocation11 + $0x248] ss:$28 sps:$4 sm:$0xff]   ;;  %v5864_v53 = vld [vmem:[#allocation11 + $0x80] ss:$28 sps:$4 sm:$0xff]  }
 0x44f   :  { %v2634_v0 = vmax.f32 %v2627_v57, 0.0  ;;  %v5868_v54 = vld [vmem:[#allocation11 + $0x88] ss:$28 sps:$4 sm:$0xff]   ;;  %v5872_v56 = vld [vmem:[#allocation11 + $0x280] ss:$28 sps:$4 sm:$0xff]  }
 0x450   :  { %v6433_v45 = vpack.c.bf16 %v2633_v42, %v2633_v42  ;;  %v5869_v57 = vld [vmem:[#allocation11 + $0xb8] ss:$28 sps:$4 sm:$0xff]   ;;  %v5873_v58 = vld [vmem:[#allocation11 + $0xc0] ss:$28 sps:$4 sm:$0xff]   ;;  %v5914_v37 = vld [vmem:[#allocation11 + $0x2b0] ss:$28 sps:$4 sm:$0xff]  }
 0x451   :  { %v6426_v1 = vpack.c.bf16 %v2634_v0, %v2634_v0  ;;  %4140 = vmatpush1.bf16.msra.mxu1 %v5800_v59  ;;  %4222 = vmatpush1.bf16.msra.mxu0 %v5803_v60  ;;  %v5876_v59 = vld [vmem:[#allocation11 + $0xf4] ss:$28 sps:$4 sm:$0xff]   ;;  %v5879_v0 = vld [vmem:[#allocation11 + $0x128] ss:$28 sps:$4 sm:$0xff]   ;;  %v5912_v32 = vld [vmem:[#allocation11 + $0x600] ss:$28 sps:$4 sm:$0xff]  }
 0x452   :  { %4141 = vmatprep.subr.bf16.mxu1 %v5808_v62  ;;  %4223 = vmatprep.subr.bf16.mxu0 %v5811_v63  ;;  %v5874_v60 = vld [vmem:[#allocation11 + $0xf0] ss:$28 sps:$4 sm:$0xff]   ;;  %v5878_v61 = vld [vmem:[#allocation11 + $0xf8] ss:$28 sps:$4 sm:$0xff]  }
 0x453   :  { %4157 = vmatprep.mubr.bf16.mxu1 %v6426_v1  ;;  %4239 = vmatprep.mubr.bf16.mxu0 %v6426_v1  ;;  %v5881_v62 = vld [vmem:[#allocation11 + $0x12c] ss:$28 sps:$4 sm:$0xff]  }
 0x454   :  { %v5882_v63 = vld [vmem:[#allocation11 + $0x2f0] ss:$28 sps:$4 sm:$0xff]  }
 0x455   :  { %4142 = vmatpush1.bf16.msra.mxu1 %v5806_v2  ;;  %4224 = vmatpush1.bf16.msra.mxu0 %v5809_v3  ;;  %v5883_v2 = vld [vmem:[#allocation11 + $0x130] ss:$28 sps:$4 sm:$0xff]   ;;  %v5886_v3 = vld [vmem:[#allocation11 + $0x164] ss:$28 sps:$4 sm:$0xff]  }
 0x456   :  { %4143 = vmatprep.subr.bf16.mxu1 %v5814_v5  ;;  %4225 = vmatprep.subr.bf16.mxu0 %v5817_v6  ;;  %v5887_v5 = vld [vmem:[#allocation11 + $0x328] ss:$28 sps:$4 sm:$0xff]   ;;  %v5884_v6 = vld [vmem:[#allocation11 + $0x160] ss:$28 sps:$4 sm:$0xff]   ;;  %v5923_v42 = vld [vmem:[#allocation11 + $0x4b0] ss:$28 sps:$4 sm:$0xff]  }
 0x459   :  { %4144 = vmatpush1.bf16.msra.mxu1 %v5812_v7  ;;  %4226 = vmatpush1.bf16.msra.mxu0 %v5815_v8  ;;  %v5888_v7 = vld [vmem:[#allocation11 + $0x168] ss:$28 sps:$4 sm:$0xff]   ;;  %v5891_v8 = vld [vmem:[#allocation11 + $0x19c] ss:$28 sps:$4 sm:$0xff]  }
 0x45a   :  { %4145 = vmatprep.subr.bf16.mxu1 %v5820_v10  ;;  %4227 = vmatprep.subr.bf16.mxu0 %v5823_v12  ;;  %v5892_v10 = vld [vmem:[#allocation11 + $0x360] ss:$28 sps:$4 sm:$0xff]   ;;  %v5889_v12 = vld [vmem:[#allocation11 + $0x198] ss:$28 sps:$4 sm:$0xff]  }
 0x45d   :  { %4146 = vmatpush1.bf16.msra.mxu1 %v5818_v13  ;;  %4228 = vmatpush1.bf16.msra.mxu0 %v5821_v14  ;;  %v5893_v13 = vld [vmem:[#allocation11 + $0x1a0] ss:$28 sps:$4 sm:$0xff]   ;;  %v5896_v14 = vld [vmem:[#allocation11 + $0x1d4] ss:$28 sps:$4 sm:$0xff]  }
 0x45e   :  { %4147 = vmatprep.subr.bf16.mxu1 %v5826_v15  ;;  %4229 = vmatprep.subr.bf16.mxu0 %v5829_v16  ;;  %v5897_v15 = vld [vmem:[#allocation11 + $0x558] ss:$28 sps:$4 sm:$0xff]   ;;  %v5894_v16 = vld [vmem:[#allocation11 + $0x1d0] ss:$28 sps:$4 sm:$0xff]  }
 0x461   :  { %4148 = vmatpush1.bf16.msra.mxu1 %v5824_v17  ;;  %4230 = vmatpush1.bf16.msra.mxu0 %v5827_v20  ;;  %v5898_v17 = vld [vmem:[#allocation11 + $0x398] ss:$28 sps:$4 sm:$0xff]   ;;  %v5901_v20 = vld [vmem:[#allocation11 + $0x20c] ss:$28 sps:$4 sm:$0xff]  }
 0x462   :  { %4149 = vmatprep.subr.bf16.mxu1 %v5832_v23  ;;  %4231 = vmatprep.subr.bf16.mxu0 %v5835_v24  ;;  %v5902_v23 = vld [vmem:[#allocation11 + $0x590] ss:$28 sps:$4 sm:$0xff]   ;;  %v5899_v24 = vld [vmem:[#allocation11 + $0x208] ss:$28 sps:$4 sm:$0xff]  }
 0x465   :  { %4150 = vmatpush1.bf16.msra.mxu1 %v5830_v26  ;;  %4232 = vmatpush1.bf16.msra.mxu0 %v5833_v27  ;;  %v5903_v26 = vld [vmem:[#allocation11 + $0x3d0] ss:$28 sps:$4 sm:$0xff]   ;;  %v5906_v27 = vld [vmem:[#allocation11 + $0x244] ss:$28 sps:$4 sm:$0xff]  }
 0x466   :  { %4151 = vmatprep.subr.bf16.mxu1 %v5838_v29  ;;  %4233 = vmatprep.subr.bf16.mxu0 %v5841_v30  ;;  %v5907_v29 = vld [vmem:[#allocation11 + $0x5c8] ss:$28 sps:$4 sm:$0xff]   ;;  %v5904_v30 = vld [vmem:[#allocation11 + $0x240] ss:$28 sps:$4 sm:$0xff]  }
 0x469   :  { %4152 = vmatpush1.bf16.msra.mxu1 %v5836_v31  ;;  %4234 = vmatpush1.bf16.msra.mxu0 %v5839_v22  ;;  %v5908_v31 = vld [vmem:[#allocation11 + $0x408] ss:$28 sps:$4 sm:$0xff]   ;;  %v5911_v22 = vld [vmem:[#allocation11 + $0x27c] ss:$28 sps:$4 sm:$0xff]  }
 0x46a   :  { %4153 = vmatprep.subr.bf16.mxu1 %v5844_v33  ;;  %4235 = vmatprep.subr.bf16.mxu0 %v5847_v34  ;;  %v5909_v33 = vld [vmem:[#allocation11 + $0x278] ss:$28 sps:$4 sm:$0xff]   ;;  %v5913_v34 = vld [vmem:[#allocation11 + $0x440] ss:$28 sps:$4 sm:$0xff]  }
 0x46d   :  { %4154 = vmatpush1.bf16.msra.mxu1 %v5842_v35  ;;  %4236 = vmatpush1.bf16.msra.mxu0 %v5845_v36  ;;  %v5916_v35 = vld [vmem:[#allocation11 + $0x2b4] ss:$28 sps:$4 sm:$0xff]  }
 0x46e   :  { %4155 = vmatprep.subr.bf16.mxu1 %v5850_v38  ;;  %4237 = vmatprep.subr.bf16.mxu0 %v5853_v39  ;;  %v5917_v36 = vld [vmem:[#allocation11 + $0x638] ss:$28 sps:$4 sm:$0xff]   ;;  %v5921_v39 = vld [vmem:[#allocation11 + $0x2ec] ss:$28 sps:$4 sm:$0xff]  }
 0x46f   :  { %v5918_v38 = vld [vmem:[#allocation11 + $0x478] ss:$28 sps:$4 sm:$0xff]  }
 0x471   :  { %4156 = vmatpush1.bf16.msra.mxu1 %v5848_v40  ;;  %4238 = vmatpush1.bf16.msra.mxu0 %v5851_v41  ;;  %v5922_v40 = vld [vmem:[#allocation11 + $0x670] ss:$28 sps:$4 sm:$0xff]   ;;  %v5919_v41 = vld [vmem:[#allocation11 + $0x2e8] ss:$28 sps:$4 sm:$0xff]  }
 0x472   :  { %4248 = vmatprep.subr.bf16.mxu1 %v5856_v9  ;;  %5064 = vmatprep.subr.bf16.mxu0 %v5857_v43  ;;  %v5926_v9 = vld [vmem:[#allocation11 + $0x324] ss:$28 sps:$4 sm:$0xff]  }
 0x473   :  { %v5927_v43 = vld [vmem:[#allocation11 + $0x6a8] ss:$28 sps:$4 sm:$0xff]  }
 0x474   :  { %4158 = vmatmul.mubr.bf16.vlgmr.msra.gmra.mrb[12].mxu1 %v6433_v45  ;;  %4240 = vmatmul.mubr.bf16.vlgmr.msra.gmra.mrb[8].mxu0 %v6433_v45 }
 0x475   :  { %4249 = vmatpush1.bf16.msra.mxu1 %v5854_v44  ;;  %4280 = vmatprep.mubr.bf16.mxu1 %v6414_v25  ;;  %v5924_v44 = vld [vmem:[#allocation11 + $0x320] ss:$28 sps:$4 sm:$0xff]  }
 0x476   :  { %5065 = vmatpush3.bf16.msra.mxu0 %v5858_v46  ;;  %4362 = vmatprep.mubr.bf16.mxu0 %v6414_v25  ;;  %v5877_v25 = vld [vmem:[#allocation11 + $0x2b8] ss:$28 sps:$4 sm:$0xff]   ;;  %v5928_v46 = vld [vmem:[#allocation11 + $0x4e8] ss:$28 sps:$4 sm:$0xff]  }
 0x477   :  { %4250 = vmatprep.subr.bf16.mxu1 %v5861_v47  ;;  %5066 = vmatprep.subr.bf16.mxu0 %v5862_v48  ;;  %v5931_v47 = vld [vmem:[#allocation11 + $0x35c] ss:$28 sps:$4 sm:$0xff]  }
 0x478   :  { %v5932_v48 = vld [vmem:[#allocation11 + $0x6e0] ss:$28 sps:$4 sm:$0xff]  }
 0x479   :  { %4251 = vmatpush1.bf16.msra.mxu1 %v5859_v49  ;;  %v5929_v49 = vld [vmem:[#allocation11 + $0x358] ss:$28 sps:$4 sm:$0xff]  }
 0x47a   :  { %5067 = vmatpush3.bf16.msra.mxu0 %v5863_v50  ;;  %4252 = vmatprep.subr.bf16.mxu1 %v5866_v51  ;;  %v5933_v50 = vld [vmem:[#allocation11 + $0x520] ss:$28 sps:$4 sm:$0xff]   ;;  %v5936_v51 = vld [vmem:[#allocation11 + $0x394] ss:$28 sps:$4 sm:$0xff]  }
 0x47b   :  { %5068 = vmatprep.subr.bf16.mxu0 %v5867_v52  ;;  %v5934_v52 = vld [vmem:[#allocation11 + $0x390] ss:$28 sps:$4 sm:$0xff]  }
 0x47d   :  { %4253 = vmatpush1.bf16.msra.mxu1 %v5864_v53  ;;  %v5939_v53 = vld [vmem:[#allocation11 + $0x3cc] ss:$28 sps:$4 sm:$0xff]  }
 0x47e   :  { %5069 = vmatpush3.bf16.msra.mxu0 %v5868_v54  ;;  %4254 = vmatprep.subr.bf16.mxu1 %v5871_v55  ;;  %v5937_v54 = vld [vmem:[#allocation11 + $0x3c8] ss:$28 sps:$4 sm:$0xff]  }
 0x47f   :  { %5070 = vmatprep.subr.bf16.mxu0 %v5872_v56  ;;  %v5942_v55 = vld [vmem:[#allocation11 + $0x404] ss:$28 sps:$4 sm:$0xff]  }
 0x480   :  { %v5940_v56 = vld [vmem:[#allocation11 + $0x400] ss:$28 sps:$4 sm:$0xff]  }
 0x481   :  { %4255 = vmatpush1.bf16.msra.mxu1 %v5869_v57  ;;  %v5945_v57 = vld [vmem:[#allocation11 + $0x43c] ss:$28 sps:$4 sm:$0xff]  }
 0x482   :  { %5071 = vmatpush3.bf16.msra.mxu0 %v5873_v58  ;;  %4256 = vmatprep.subr.bf16.mxu1 %v5876_v59  ;;  %v5943_v58 = vld [vmem:[#allocation11 + $0x438] ss:$28 sps:$4 sm:$0xff]  }
 0x483   :  { %5072 = vmatprep.subr.bf16.mxu0 %v5877_v25  ;;  %v5948_v59 = vld [vmem:[#allocation11 + $0x474] ss:$28 sps:$4 sm:$0xff]  }
 0x484   :  { %v5946_v25 = vld [vmem:[#allocation11 + $0x470] ss:$28 sps:$4 sm:$0xff]  }
 0x485   :  { %4257 = vmatpush1.bf16.msra.mxu1 %v5874_v60  ;;  %v5949_v60 = vld [vmem:[#allocation11 + $0x4a8] ss:$28 sps:$4 sm:$0xff]  }
 0x486   :  { %5073 = vmatpush3.bf16.msra.mxu0 %v5878_v61  ;;  %4258 = vmatprep.subr.bf16.mxu1 %v5881_v62  ;;  %v5954_v61 = vld [vmem:[#allocation11 + $0x4e4] ss:$28 sps:$4 sm:$0xff]   ;;  %v5957_v62 = vld [vmem:[#allocation11 + $0x51c] ss:$28 sps:$4 sm:$0xff]  }
 0x487   :  { %5074 = vmatprep.subr.bf16.mxu0 %v5882_v63  ;;  %v5955_v63 = vld [vmem:[#allocation11 + $0x518] ss:$28 sps:$4 sm:$0xff]  }
 0x489   :  { %4259 = vmatpush1.bf16.msra.mxu1 %v5879_v0  ;;  %v5960_v0 = vld [vmem:[#allocation11 + $0x554] ss:$28 sps:$4 sm:$0xff]  }
 0x48a   :  { %5075 = vmatpush3.bf16.msra.mxu0 %v5883_v2  ;;  %4260 = vmatprep.subr.bf16.mxu1 %v5886_v3  ;;  %v5958_v2 = vld [vmem:[#allocation11 + $0x550] ss:$28 sps:$4 sm:$0xff]  }
 0x48b   :  { %5076 = vmatprep.subr.bf16.mxu0 %v5887_v5  ;;  %v5963_v3 = vld [vmem:[#allocation11 + $0x58c] ss:$28 sps:$4 sm:$0xff]  }
 0x48c   :  { %v5961_v5 = vld [vmem:[#allocation11 + $0x588] ss:$28 sps:$4 sm:$0xff]  }
 0x48d   :  { %4261 = vmatpush1.bf16.msra.mxu1 %v5884_v6  ;;  %v5966_v6 = vld [vmem:[#allocation11 + $0x5c4] ss:$28 sps:$4 sm:$0xff]  }
 0x48e   :  { %5077 = vmatpush3.bf16.msra.mxu0 %v5888_v7  ;;  %4262 = vmatprep.subr.bf16.mxu1 %v5891_v8  ;;  %v5964_v7 = vld [vmem:[#allocation11 + $0x5c0] ss:$28 sps:$4 sm:$0xff]  }
 0x48f   :  { %5078 = vmatprep.subr.bf16.mxu0 %v5892_v10  ;;  %v5969_v8 = vld [vmem:[#allocation11 + $0x5fc] ss:$28 sps:$4 sm:$0xff]  }
 0x490   :  { %v5967_v10 = vld [vmem:[#allocation11 + $0x5f8] ss:$28 sps:$4 sm:$0xff]  }
 0x491   :  { %4263 = vmatpush1.bf16.msra.mxu1 %v5889_v12  ;;  %v5972_v12 = vld [vmem:[#allocation11 + $0x634] ss:$28 sps:$4 sm:$0xff]  }
 0x492   :  { %5079 = vmatpush3.bf16.msra.mxu0 %v5893_v13  ;;  %4264 = vmatprep.subr.bf16.mxu1 %v5896_v14  ;;  %v5970_v13 = vld [vmem:[#allocation11 + $0x630] ss:$28 sps:$4 sm:$0xff]  }
 0x493   :  { %5086 = vmatprep.subr.bf16.mxu0 %v5897_v15  ;;  %v5975_v14 = vld [vmem:[#allocation11 + $0x66c] ss:$28 sps:$4 sm:$0xff]  }
 0x494   :  { %v5973_v15 = vld [vmem:[#allocation11 + $0x668] ss:$28 sps:$4 sm:$0xff]  }
 0x495   :  { %4363 = vmatmul.mubr.bf16.vlgmr.msra.gmra.mrb[12].mxu0 %v6416_v28  ;;  %4265 = vmatpush1.bf16.msra.mxu1 %v5894_v16  ;;  %v5978_v16 = vld [vmem:[#allocation11 + $0x6a4] ss:$28 sps:$4 sm:$0xff]  }
 0x496   :  { %5087 = vmatpush3.bf16.msra.mxu0 %v5898_v17  ;;  %4402 = vmatprep.mubr.bf16.mxu0 %v6426_v1  ;;  %v5976_v17 = vld [vmem:[#allocation11 + $0x6a0] ss:$28 sps:$4 sm:$0xff]  }
 0x497   :  { %4266 = vmatprep.subr.bf16.mxu1 %v5901_v20  ;;  %5088 = vmatprep.subr.bf16.mxu0 %v5902_v23  ;;  %v5981_v20 = vld [vmem:[#allocation11 + $0x6dc] ss:$28 sps:$4 sm:$0xff]  }
 0x498   :  { %v5979_v23 = vld [vmem:[#allocation11 + $0x6d8] ss:$28 sps:$4 sm:$0xff]  }
 0x499   :  { %4267 = vmatpush1.bf16.msra.mxu1 %v5899_v24  ;;  %v6448_v24 = vld [vmem:[%s6497_s9] sm:$0xff]  ;;  %s6199_s9 = smov [#allocation14]  }
 0x49a   :  { %5089 = vmatpush3.bf16.msra.mxu0 %v5903_v26  ;;  %4268 = vmatprep.subr.bf16.mxu1 %v5906_v27  ;;  %v2900_v26 = vrot.slane %v6448_v24, %v6372_v19  ;;  %v2908_v27 = vrot.slane %v6448_v24, %v6394_v4  ;;  %s4489_s4 = sshll.u32 %s6199_s9, 4  ;;  %s4490_s4 = int_to_ptr.vmem [resolvable:$true] %s4489_s4 }
 0x49b   :  { %5090 = vmatprep.subr.bf16.mxu0 %v5907_v29  ;;  %v2904_v29 = vrot.slane %v6448_v24, %v6380_v21  ;;  %s6130_s20 = scalar_lea.vmem %s4490_s4, 256  ;;  %p6135_p7 = scmp.lt.s32.totalorder %s4490_s4, %s4490_s4 }
 0x49c   :  { %p6131_p6 = scmp.ne.s32.totalorder %s4490_s4, %s6130_s20  ;;  %p6136_p8 = scmp.lt.s32.totalorder %s6130_s20, %s6130_s20 }
 0x49d   :  { %4269 = vmatpush1.bf16.msra.mxu1 %v5904_v30  ;;  %v2912_v30 = vrot.slane %v6448_v24, %v6383_v11 }
 0x49e   :  { %5091 = vmatpush3.bf16.msra.mxu0 %v5908_v31  ;;  %4270 = vmatprep.subr.bf16.mxu1 %v5911_v22  ;;  %p6137_p9 = por %p6136_p8, %p6135_p7 }
 0x49f   :  { %5092 = vmatprep.subr.bf16.mxu0 %v5912_v32 }
 0x4a0   :  { %p6138_p10 = pnand %p6137_p9, %p6131_p6 }
 0x4a1   :  { %4271 = vmatpush1.bf16.msra.mxu1 %v5909_v33 }
 0x4a2   :  { %5093 = vmatpush3.bf16.msra.mxu0 %v5913_v34  ;;  %4272 = vmatprep.subr.bf16.mxu1 %v5916_v35 }
 0x4a3   :  { %5094 = vmatprep.subr.bf16.mxu0 %v5917_v36 }
 0x4a5   :  { %4273 = vmatpush1.bf16.msra.mxu1 %v5914_v37 }
 0x4a6   :  { %5095 = vmatpush3.bf16.msra.mxu0 %v5918_v38  ;;  %4274 = vmatprep.subr.bf16.mxu1 %v5921_v39 }
 0x4a7   :  { %5096 = vmatprep.subr.bf16.mxu0 %v5922_v40 }
 0x4a9   :  { %4275 = vmatpush1.bf16.msra.mxu1 %v5919_v41 }
 0x4aa   :  { %5097 = vmatpush3.bf16.msra.mxu0 %v5923_v42  ;;  %4276 = vmatprep.subr.bf16.mxu1 %v5926_v9 }
 0x4ab   :  { %5098 = vmatprep.subr.bf16.mxu0 %v5927_v43 }
 0x4ad   :  { %4277 = vmatpush1.bf16.msra.mxu1 %v5924_v44 }
 0x4ae   :  { %5099 = vmatpush3.bf16.msra.mxu0 %v5928_v46  ;;  %4278 = vmatprep.subr.bf16.mxu1 %v5931_v47 }
 0x4af   :  { %5100 = vmatprep.subr.bf16.mxu0 %v5932_v48 }
 0x4b1   :  { %4279 = vmatpush1.bf16.msra.mxu1 %v5929_v49 }
 0x4b2   :  { %5101 = vmatpush3.bf16.msra.mxu0 %v5933_v50  ;;  %4289 = vmatprep.subr.bf16.mxu1 %v5936_v51 }
 0x4b4   :  { %4281 = vmatmul.mubr.bf16.vlgmr.msra.gmra.mrb[16].mxu1 %v6416_v28  ;;  %v5951_v28 = vld [vmem:[#allocation11 + $0x4ac] ss:$28 sps:$4 sm:$0xff]  }
 0x4b5   :  { %4403 = vmatmul.mubr.bf16.vlgmr.msra.gmra.mrb[16].mxu0 %v6433_v45  ;;  %4290 = vmatpush1.bf16.msra.mxu1 %v5934_v52 }
 0x4b6   :  { %4321 = vmatprep.mubr.bf16.mxu1 %v6426_v1  ;;  %4291 = vmatprep.subr.bf16.mxu1 %v5939_v53  ;;  %v5952_v1 = vld [vmem:[#allocation11 + $0x4e0] ss:$28 sps:$4 sm:$0xff]  }
 0x4b9   :  { %4292 = vmatpush1.bf16.msra.mxu1 %v5937_v54 }
 0x4ba   :  { %4293 = vmatprep.subr.bf16.mxu1 %v5942_v55 }
 0x4bd   :  { %4294 = vmatpush1.bf16.msra.mxu1 %v5940_v56 }
 0x4be   :  { %4295 = vmatprep.subr.bf16.mxu1 %v5945_v57 }
 0x4c1   :  { %4296 = vmatpush1.bf16.msra.mxu1 %v5943_v58 }
 0x4c2   :  { %4297 = vmatprep.subr.bf16.mxu1 %v5948_v59 }
 0x4c5   :  { %4298 = vmatpush1.bf16.msra.mxu1 %v5946_v25 }
 0x4c6   :  { %4299 = vmatprep.subr.bf16.mxu1 %v5951_v28 }
 0x4c9   :  { %4300 = vmatpush1.bf16.msra.mxu1 %v5949_v60 }
 0x4ca   :  { %4301 = vmatprep.subr.bf16.mxu1 %v5954_v61 }
 0x4cd   :  { %4302 = vmatpush1.bf16.msra.mxu1 %v5952_v1 }
 0x4ce   :  { %4303 = vmatprep.subr.bf16.mxu1 %v5957_v62 }
 0x4d1   :  { %4304 = vmatpush1.bf16.msra.mxu1 %v5955_v63 }
 0x4d2   :  { %4305 = vmatprep.subr.bf16.mxu1 %v5960_v0 }
 0x4d5   :  { %4306 = vmatpush1.bf16.msra.mxu1 %v5958_v2 }
 0x4d6   :  { %4307 = vmatprep.subr.bf16.mxu1 %v5963_v3 }
 0x4d9   :  { %4308 = vmatpush1.bf16.msra.mxu1 %v5961_v5 }
 0x4da   :  { %4309 = vmatprep.subr.bf16.mxu1 %v5966_v6 }
 0x4dd   :  { %4310 = vmatpush1.bf16.msra.mxu1 %v5964_v7 }
 0x4de   :  { %4311 = vmatprep.subr.bf16.mxu1 %v5969_v8 }
 0x4e1   :  { %4312 = vmatpush1.bf16.msra.mxu1 %v5967_v10 }
 0x4e2   :  { %4313 = vmatprep.subr.bf16.mxu1 %v5972_v12 }
 0x4e5   :  { %4314 = vmatpush1.bf16.msra.mxu1 %v5970_v13 }
 0x4e6   :  { %4315 = vmatprep.subr.bf16.mxu1 %v5975_v14 }
 0x4e9   :  { %4316 = vmatpush1.bf16.msra.mxu1 %v5973_v15 }
 0x4ea   :  { %4317 = vmatprep.subr.bf16.mxu1 %v5978_v16 }
 0x4ed   :  { %4318 = vmatpush1.bf16.msra.mxu1 %v5976_v17 }
 0x4ee   :  { %4319 = vmatprep.subr.bf16.mxu1 %v5981_v20 }
 0x4f1   :  { %4320 = vmatpush1.bf16.msra.mxu1 %v5979_v23 }
 0x4f4   :  { %4322 = vmatmul.mubr.bf16.vlgmr.msra.gmra.mrb[16].mxu1 %v6433_v45 }
 0x547   :  { %v4159_v31 = vpop.f32.mrb[12].mxu1  ;;  %v4241_v22 = vpop.f32.mrb[8].mxu0 }
 0x548   :  { %v5114_v45 = vadd.f32 %v4159_v31, %v2900_v26  ;;  %v5116_v32 = vadd.f32 %v4241_v22, %v2908_v27  ;;  %v4161_v33 = vpop.f32.mrb[13].mxu1  ;;  %v4243_v34 = vpop.f32.mrb[9].mxu0 }
 0x549   :  { %v5115_v35 = vadd.f32 %v4161_v33, %v2904_v29  ;;  %v5117_v36 = vadd.f32 %v4243_v34, %v2912_v30  ;;  %v4163_v37 = vpop.f32.mrb[14].mxu1  ;;  %v4245_v38 = vpop.f32.mrb[10].mxu0 }
 0x54a   :  { %v4410_v19 = vmul.f32 0.5, %v5114_v45  ;;  %v4412_v39 = vmul.f32 0.5, %v5116_v32  ;;  %v4164_v40 = vpop.f32.mrb[15].mxu1  ;;  %v4246_v4 = vpop.f32.mrb[11].mxu0 }
 0x54b   :  { %v4411_v41 = vmul.f32 0.5, %v5115_v35  ;;  %v4413_v42 = vmul.f32 0.5, %v5117_v36 }
 0x54c   :  { %5984 = vtanh.f32 %v4410_v19 }
 0x54d   :  { %5986 = vtanh.f32 %v4412_v39 }
 0x54e   :  { %5988 = vtanh.f32 %v4411_v41 }
 0x54f   :  { %5990 = vtanh.f32 %v4413_v42 }
 0x556   :  { %v5985_v21 = vpop.eup %5984 }
 0x557   :  { %v5987_v11 = vpop.eup %5986  ;;  %v4424_v9 = vmul.f32 0.5, %v5985_v21 }
 0x558   :  { %v5989_v43 = vpop.eup %5988  ;;  %v4426_v44 = vmul.f32 0.5, %v5987_v11 }
 0x559   :  { %v5991_v46 = vpop.eup %5990  ;;  %v4431_v47 = vadd.f32 0.5, %v4424_v9  ;;  %v4425_v48 = vmul.f32 0.5, %v5989_v43 }
 0x55a   :  { %v4433_v49 = vadd.f32 0.5, %v4426_v44  ;;  %v4427_v50 = vmul.f32 0.5, %v5991_v46 }
 0x55b   :  { %v4432_v51 = vadd.f32 0.5, %v4425_v48 }
 0x55c   :  { %v4434_v52 = vadd.f32 0.5, %v4427_v50 }
 0x55d   :  { %v5060_v53 = vpack.c.bf16 %v4432_v51, %v4431_v47 }
 0x55e   :  { %v5061_v54 = vpack.c.bf16 %v4434_v52, %v4433_v49 }
 0x55f   :  { %4467 = vst [vmem:[#allocation13] sm:$0xff] %v5060_v53 }
 0x560   :  { %4468 = vst [vmem:[#allocation13 + $0x8] sm:$0xff] %v5061_v54 }
 0x561   :  { %6141 = shalt.err (!%p6138_p10)
}
 0x562   :  { %s6142_s19 = scalar_lea.hbm %s6499_s11, 256 }
 0x563   :  { %p6143_p11 = scmp.ne.s32.totalorder %s6499_s11, %s6142_s19  ;;  %p6146_p12 = scmp.lt.u32.totalorder %s6142_s19, %s6499_s11 }
 0x565   :  { %p6148_p13 = pnand %p6146_p12, %p6143_p11 }
 0x567   :  { %6151 = shalt.err (!%p6148_p13)
}
 0x568   :  { %4492 = dma.vmem_to_hbm [thread:$0]  %s4490_s4, 256, %s6499_s11, [#allocation15]   ;;  %v5080_v55 = vpop.f32.mrb[12].mxu0  ;;  %v2923_v25 = vsub.s32 6, %v6369_v18  ;;  %v2915_v10 = vsub.s32 4, %v6369_v18  ;;  %v2919_v12 = vsub.s32 5, %v6369_v18 }
 0x569   :  { %v5081_v56 = vpop.f32.mrb[13].mxu0  ;;  %s6200_s11 = smov [#allocation13]  }
 0x56a   :  { %v5082_v57 = vadd.f32 %v5081_v56, %v5080_v55  ;;  %v5083_v58 = vpop.f32.mrb[14].mxu0  ;;  %v2924_v28 = vrot.slane %v6448_v24, %v2923_v25  ;;  %v2916_v13 = vrot.slane %v6448_v24, %v2915_v10  ;;  %v2920_v14 = vrot.slane %v6448_v24, %v2919_v12  ;;  %s4479_s23 = sshll.u32 %s6200_s11, 4  ;;  %s4480_s23 = int_to_ptr.vmem [resolvable:$true] %s4479_s23 }
 0x56b   :  { %v5084_v59 = vpop.f32.mrb[15].mxu0  ;;  %s6152_s24 = scalar_lea.vmem %s4480_s23, 448  ;;  %p6157_p1 = scmp.lt.s32.totalorder %s4480_s23, %s4480_s23 }
 0x56c   :  { %v4365_v1 = vadd.f32 %v5082_v57, %v2924_v28  ;;  %p6153_p0 = scmp.ne.s32.totalorder %s4480_s23, %s6152_s24  ;;  %p6158_p2 = scmp.lt.s32.totalorder %s6152_s24, %s6152_s24 }
 0x56e   :  { %p6159_p3 = por %p6158_p2, %p6157_p1 }
 0x570   :  { %p6160_p4 = pnand %p6159_p3, %p6153_p0 }
 0x588   :  { %v5102_v60 = vpop.f32.mrb[16].mxu0 }
 0x589   :  { %v5103_v61 = vpop.f32.mrb[17].mxu0 }
 0x58a   :  { %v5104_v62 = vadd.f32 %v5103_v61, %v5102_v60  ;;  %v5105_v63 = vpop.f32.mrb[18].mxu0 }
 0x58b   :  { %v5106_v0 = vpop.f32.mrb[19].mxu0 }
 0x58c   :  { %v4405_v2 = vadd.f32 %v5104_v62, %v4365_v1 }
 0x58e   :  { %v4416_v3 = vmul.f32 0.5, %v4405_v2 }
 0x590   :  { %5992 = vtanh.f32 %v4416_v3 }
 0x59a   :  { %v5993_v5 = vpop.eup %5992 }
 0x59b   :  { %v4430_v6 = vmul.f32 0.5, %v5993_v5 }
 0x59d   :  { %v4437_v7 = vadd.f32 0.5, %v4430_v6 }
 0x59f   :  { %v5063_v8 = vpack.c.bf16 %v4437_v7, %v4437_v7 }
 0x5a1   :  { %4470 = vst [vmem:[#allocation13 + $0x18] sm:$0xf] %v5063_v8 }
 0x5c7   :  { %v4323_v15 = vpop.f32.mrb[16].mxu1 }
 0x5c8   :  { %v5118_v16 = vadd.f32 %v4323_v15, %v2916_v13  ;;  %v4325_v17 = vpop.f32.mrb[17].mxu1 }
 0x5c9   :  { %v5119_v20 = vadd.f32 %v4325_v17, %v2920_v14  ;;  %v4327_v23 = vpop.f32.mrb[18].mxu1 }
 0x5ca   :  { %v4414_v26 = vmul.f32 0.5, %v5118_v16  ;;  %v4328_v27 = vpop.f32.mrb[19].mxu1 }
 0x5cb   :  { %v4415_v29 = vmul.f32 0.5, %v5119_v20 }
 0x5cc   :  { %5994 = vtanh.f32 %v4414_v26 }
 0x5cd   :  { %5996 = vtanh.f32 %v4415_v29 }
 0x5d6   :  { %v5995_v30 = vpop.eup %5994 }
 0x5d7   :  { %v5997_v31 = vpop.eup %5996  ;;  %v4428_v22 = vmul.f32 0.5, %v5995_v30 }
 0x5d8   :  { %v4429_v45 = vmul.f32 0.5, %v5997_v31 }
 0x5d9   :  { %v4435_v32 = vadd.f32 0.5, %v4428_v22 }
 0x5da   :  { %v4436_v18 = vadd.f32 0.5, %v4429_v45 }
 0x5dc   :  { %v5062_v33 = vpack.c.bf16 %v4436_v18, %v4435_v32 }
 0x5de   :  { %4469 = vst [vmem:[#allocation13 + $0x10] sm:$0xff] %v5062_v33 }
 0x5df   :  { %6163 = shalt.err (!%p6160_p4)
}
 0x5e0   :  { %s6164_s29 = scalar_lea.hbm %s6498_s10, 448 }
 0x5e1   :  { %p6165_p5 = scmp.ne.s32.totalorder %s6498_s10, %s6164_s29  ;;  %p6168_p6 = scmp.lt.u32.totalorder %s6164_s29, %s6498_s10 }
 0x5e3   :  { %p6170_p7 = pnand %p6168_p6, %p6165_p5 }
 0x5e5   :  { %6173 = shalt.err (!%p6170_p7)
}
 0x5e6   :  { %4482 = dma.vmem_to_hbm [thread:$0]  %s4480_s23, 448, %s6498_s10, [#allocation4]  }
 0x5e7   :  { %6182 = dma.done.wait [#allocation4], 448  }
 0x5e8   :  { %6183 = vsyncadd [#allocation4], 4294966848 }
 0x5e9   :  { %6184 = dma.done.wait [#allocation15], 256  }
 0x5ea   :  { %6185 = vsyncadd [#allocation15], 4294967040 }
 0x5eb   :  { %4499 = vsyncpa [#allocation3], 1 }
 0x5ec   :  { %4500 = vsyncpa [#allocation6], 1 }
 0x5ed   :  { %4501 = vsyncpa [#allocation9], 1 }
 0x5ee   :  { %4502 = vsyncpa [#allocation12], 1 }
 0x5ef   :  { %4503 = vsyncpa [#allocation4], 1 }
 0x5f0   :  { %4504 = vsyncpa [#allocation15], 1 }

</bundles_post_ra>
